<compile_context>
chip_gen: v6e
topology: v6e:2x2x1
jax: 0.10.0
libtpu: 0.0.40
codegen_flags: <defaults>
</compile_context>

<pallas_src>
import functools

import jax
import jax.numpy as jnp
from jax.experimental import pallas as pl
from jax.experimental.pallas import tpu as pltpu

FACTORS = [1, 1, 1, 1, 1 / 2, 1 / 4, 1 / 8, 1 / 16, 1 / 32]
LRELU = 0.2
_ROW0 = 8          # sublane-aligned offset where conv inputs are staged


# ---------------------------------------------------------------------------
# In-kernel helpers (operate on (length, channels) f32 values / refs)
# ---------------------------------------------------------------------------
def _leaky(v):
    return jnp.where(v >= 0, v, LRELU * v)


def _conv1x1(x2d, p):
    """WSConv1d, kernel_size=1, stride=1 (weights pre-scaled in the wrapper)."""
    return jnp.dot(x2d, p["w"][0], preferred_element_type=jnp.float32) + p["b"][...]


def _convk(x2d, p, pad, pad_ref, post_lrelu):
    """WSConv1d, kernel_size K, stride 1, `pad` zeros per side (pre-scaled w).

    The input value is staged into the shared VMEM scratch `pad_ref` at a
    sublane-aligned offset.  Only the halo rows this conv will actually read
    (rows [ROW0-pad, ROW0) and [ROW0+rows, ROW0+rows+pad), cols [0, cin)) are
    zeroed -- the data rows are fully overwritten by the stage, so no full
    memset of the scratch is needed.  Every tap is then a plain static-offset
    ref load feeding an MXU matmul; no wrapper-side jnp.pad, no relayouts.
    """
    k_size, cin, cout = p["w"].shape
    rows = x2d.shape[0]
    l_out = rows + 2 * pad - k_size + 1
    if pad > 0:
        halo = jnp.zeros((pad, cin), jnp.float32)
        pad_ref[_ROW0 - pad:_ROW0, 0:cin] = halo
        pad_ref[_ROW0 + rows:_ROW0 + rows + pad, 0:cin] = halo
    pad_ref[_ROW0:_ROW0 + rows, 0:cin] = x2d
    acc = jnp.zeros((l_out, cout), jnp.float32)
    for k in range(k_size):                           # static unroll over taps
        start = _ROW0 - pad + k
        acc = acc + jnp.dot(pad_ref[start:start + l_out, 0:cin], p["w"][k],
                            preferred_element_type=jnp.float32)
    acc = acc + p["b"][...]
    if post_lrelu:
        acc = _leaky(acc)
    return acc


def _avg_pool(x2d):
    """AvgPool1d(kernel_size=2, stride=2) as a tiny MXU matmul.

    out = P @ x with P[i, 2i] = P[i, 2i+1] = 0.5 built from 2-D iotas; avoids
    strided / interleaved memory access entirely.
    """
    rows = x2d.shape[0]
    half = rows // 2
    r = jax.lax.broadcasted_iota(jnp.int32, (half, rows), 0)
    c = jax.lax.broadcasted_iota(jnp.int32, (half, rows), 1)
    sel = jnp.logical_or(c == 2 * r, c == 2 * r + 1)
    pool_mat = sel.astype(jnp.float32) * 0.5
    return jnp.dot(pool_mat, x2d, preferred_element_type=jnp.float32)


# ---------------------------------------------------------------------------
# Fused forward kernel: whole discriminator for one batch element / grid step
# ---------------------------------------------------------------------------
def _disc_kernel(*refs, treedef, n_leaves, steps, has_alpha):
    pos = 0
    alpha_ref = None
    if has_alpha:
        alpha_ref = refs[pos]
        pos += 1
    x_ref = refs[pos]
    pos += 1
    leaf_refs = refs[pos:pos + n_leaves]
    pos += n_leaves
    o_ref = refs[pos]
    pad_ref = refs[pos + 1]

    used = jax.tree_util.tree_unflatten(treedef, list(leaf_refs))
    sig, prog, fb = used["sig"], used["prog"], used["final"]

    def conv_block(y, pb):                            # use_pixelnorm=False
        y = _convk(y, pb["c1"], 1, pad_ref, post_lrelu=True)
        y = _convk(y, pb["c2"], 1, pad_ref, post_lrelu=True)
        return y

    def final_block(y):
        y = _convk(y, fb[0], 1, pad_ref, post_lrelu=True)
        y = _convk(y, fb[1], 0, pad_ref, post_lrelu=True)
        return _conv1x1(y, fb[2])

    x = x_ref[0].astype(jnp.float32)                  # (L, signal_channels)

    if steps == 0:
        res = final_block(_conv1x1(x, sig[0]))
        o_ref[0] = res.astype(o_ref.dtype)
        return

    out = None
    for step in range(steps):
        down = _conv1x1(x, sig[steps - step])
        x = _avg_pool(x)
        if step == 0:
            out = down     # faithfully reproduced: immediately overwritten (as in torch)
        out = conv_block(down, prog[steps - step - 1])

    final_down = final_block(_leaky(out))                      # final_block(leaky(out))
    final_out = final_block(_leaky(_conv1x1(x, sig[0])))
    a = alpha_ref[0, 0]
    res = a * final_out + (1.0 - a) * final_down               # torch-style broadcast
    o_ref[0] = res.astype(o_ref.dtype)


# ---------------------------------------------------------------------------
# Wrapper: parameter plumbing + single pallas_call
# ---------------------------------------------------------------------------
def _scaled(p):
    # WSConv1d: conv(x * scale) + b  ==  conv_{w*scale}(x) + b   (conv is linear)
    k, cin, _ = p["w"].shape
    scale = (2.0 / (cin * k)) ** 0.5                 # gain = 2
    return {"w": (p["w"] * scale).astype(jnp.float32),
            "b": p["b"].reshape(1, -1).astype(jnp.float32)}


def _gather_used(params, steps):
    """Only the layers this `steps` actually touches are shipped to the kernel."""
    sig_idx = sorted({0} | {steps - s for s in range(steps)})
    prog_idx = sorted({steps - s - 1 for s in range(steps)})
    return {
        "sig": {j: _scaled(params["signal"][j]) for j in sig_idx},
        "prog": {j: {"c1": _scaled(params["prog"][j]["c1"]),
                     "c2": _scaled(params["prog"][j]["c2"])}
                 for j in prog_idx},
        "final": tuple(_scaled(p) for p in params["final"]),
    }


def discriminator_forward(params, x_ncl, alpha, steps):
    """x_ncl: (N, signal_channels, L) as in PyTorch.  Returns (N, 1, L_out)."""
    n, cs, sig_len = x_ncl.shape
    in_ch = params["final"][2]["w"].shape[1]

    if steps == 0:
        out_len = sig_len - 3
    else:
        fd_len = sig_len // (2 ** (steps - 1)) - 3
        fo_len = sig_len // (2 ** steps) - 3
        if fo_len == fd_len or fo_len == 1:
            out_len = fd_len
        elif fd_len == 1:
            out_len = fo_len
        else:
            raise ValueError("fade_in broadcast requires compatible lengths")

    x_nlc = jnp.transpose(x_ncl, (0, 2, 1)).astype(jnp.float32)  # tiny NCL -> NLC

    used = _gather_used(params, steps)
    leaves, treedef = jax.tree_util.tree_flatten(used)

    has_alpha = steps > 0
    inputs, in_specs = [], []
    if has_alpha:
        inputs.append(jnp.asarray(alpha, jnp.float32).reshape(1, 1))
        in_specs.append(pl.BlockSpec((1, 1), lambda i: (0, 0),
                                     memory_space=pltpu.MemorySpace.SMEM))
    inputs.append(x_nlc)
    in_specs.append(pl.BlockSpec((1, sig_len, cs), lambda i: (i, 0, 0)))
    for leaf in leaves:
        inputs.append(leaf)
        # Same block index every grid step -> Pallas keeps weights resident in
        # VMEM (no re-DMA per batch element).
        in_specs.append(pl.BlockSpec(leaf.shape,
                                     lambda i, nd=leaf.ndim: (0,) * nd))

    kernel = functools.partial(_disc_kernel, treedef=treedef,
                               n_leaves=len(leaves), steps=steps,
                               has_alpha=has_alpha)

    y_nlc = pl.pallas_call(
        kernel,
        out_shape=jax.ShapeDtypeStruct((n, out_len, 1), jnp.float32),
        grid=(n,),
        in_specs=in_specs,
        out_specs=pl.BlockSpec((1, out_len, 1), lambda i: (i, 0, 0)),
        scratch_shapes=[pltpu.VMEM((sig_len + 2 * _ROW0, max(in_ch, cs)),
                                   jnp.float32)],
        compiler_params=pltpu.CompilerParams(
            dimension_semantics=("parallel",)),
    )(*inputs)

    # (N, L_out, 1) -> NCL (N, 1, L_out): moving a size-1 axis is a free reshape.
    return jnp.reshape(y_nlc, (n, 1, out_len))


# ---------------------------------------------------------------------------
# Parameters (weights stored (K, Cin, Cout); nn.init.normal_ / zero bias)
# ---------------------------------------------------------------------------
def _ws_params(key, cin, cout, ksize):
    return {"w": jax.random.normal(key, (ksize, cin, cout), jnp.float32),
            "b": jnp.zeros((cout,), jnp.float32)}


def build_params(key, in_channels, signal_channels):
    ch = [int(in_channels * f) for f in FACTORS]
    keys = iter(jax.random.split(key, 64))

    signal = []
    for j in range(9):
        if j == 0:
            # TODO(synk): __init__ gives int(C*factors[8]); reconciled to ch[7]
            # so the shared final_block accepts both forward branches.
            cout = ch[7]
        elif j <= 7:
            cout = ch[8 - j]
        else:
            cout = ch[0]                                   # initial_signal
        signal.append(_ws_params(next(keys), signal_channels, cout, 1))

    prog = []
    for j in range(8):
        # TODO(synk): __init__ input is ch[8-j]; reconciled to ch[7-j], which is
        # what forward actually feeds (signal_layers[j+1] output).
        cin = ch[7 - j]
        cout = ch[7 - j]
        prog.append({"c1": _ws_params(next(keys), cin, cout, 3),
                     "c2": _ws_params(next(keys), cout, cout, 3)})
    # TODO(synk): __init__ first conv expects in_channels+1 (for minibatch_std,
    # which this forward never calls); reconciled to ch[7].
    final = [_ws_params(next(keys), ch[7], in_channels, 3),
             _ws_params(next(keys), in_channels, in_channels, 4),
             _ws_params(next(keys), in_channels, 1, 1)]
    # NOTE: PixelNorm / minibatch_std exist in the torch module but are never
    # executed on this forward path (use_pixelnorm=False, minibatch_std unused).
    return {"signal": signal, "prog": prog, "final": final}


# ---------------------------------------------------------------------------
# Plain-JAX reference (structural sanity check only)
# ---------------------------------------------------------------------------
def _ref_wsconv(x, p, pad):
    w, b = p["w"], p["b"]
    k, cin, _ = w.shape
    scale = (2.0 / (cin * k)) ** 0.5
    xs = x * scale
    if pad:
        xs = jnp.pad(xs, ((pad, pad), (0, 0)))
    l_out = x.shape[0] + 2 * pad - k + 1
    acc = jnp.zeros((l_out, w.shape[2]), jnp.float32)
    for kk in range(k):
        acc = acc + jnp.dot(xs[kk:kk + l_out], w[kk],
                            precision=jax.lax.Precision.HIGHEST)
    return acc + b[None, :]


def _ref_forward(params, x_ncl, alpha, steps):
    sig, prog, fb = params["signal"], params["prog"], params["final"]

    def lrelu(v):
        return jnp.where(v >= 0, v, LRELU * v)

    def conv_block(pb, y):
        y = lrelu(_ref_wsconv(y, pb["c1"], 1))
        y = lrelu(_ref_wsconv(y, pb["c2"], 1))
        return y

    def final_block(y):
        y = lrelu(_ref_wsconv(y, fb[0], 1))
        y = lrelu(_ref_wsconv(y, fb[1], 0))
        return _ref_wsconv(y, fb[2], 0)

    outs = []
    for bidx in range(x_ncl.shape[0]):
        x = x_ncl[bidx].T.astype(jnp.float32)               # (L, Cs)
        if steps == 0:
            y = final_block(_ref_wsconv(x, sig[0], 0))
        else:
            out = None
            for step in range(steps):
                down = _ref_wsconv(x, sig[steps - step], 0)
                half = x.shape[0] // 2
                x = (x[0:2 * half:2] + x[1:2 * half:2]) * 0.5
                if step == 0:
                    out = down
                out = conv_block(prog[steps - step - 1], down)
            fd = final_block(lrelu(out))
            fo = final_block(lrelu(_ref_wsconv(x, sig[0], 0)))
            a = jnp.float32(alpha)
            y = a * fo + (1.0 - a) * fd
        outs.append(y[:, 0])
    return jnp.stack(outs)[:, None, :]


if __name__ == "__main__":
    key = jax.random.PRNGKey(0)
    IN_CHANNELS = 32
    SIGNAL_CHANNELS = 3
    N, L = 2, 16            # L = 4 * 2**steps so fade_in broadcasting is valid
    STEPS = 2
    ALPHA = 0.7

    params = build_params(key, IN_CHANNELS, SIGNAL_CHANNELS)
    x = jax.random.normal(jax.random.fold_in(key, 999),
                          (N, SIGNAL_CHANNELS, L), jnp.float32)

    fwd = jax.jit(discriminator_forward, static_argnames=("steps",))
    y = fwd(params, x, ALPHA, steps=STEPS)
    y = jax.block_until_ready(y)

    assert y.shape == (N, 1, L // 2 - 3), y.shape
    assert bool(jnp.all(jnp.isfinite(y)))

    # Structural sanity check against a plain-JAX reference; tolerance is loose
    # on purpose so it is insensitive to MXU / XLA matmul precision differences.
    y_ref = _ref_forward(params, x, ALPHA, STEPS)
    assert y_ref.shape == y.shape
    assert bool(jnp.allclose(y, y_ref, rtol=5e-2, atol=5e-2)), (
        float(jnp.max(jnp.abs(y - y_ref))))

    print("KERNEL_OK")
</pallas_src>

<mosaic_0001>
module attributes {stable_mosaic.version = 11 : i64} {
  func.func @_disc_kernel(%arg0: i32, %arg1: memref<1x1xf32, #tpu.memory_space<smem>>, %arg2: memref<1x16x3xf32, #tpu.memory_space<vmem>>, %arg3: memref<1x32xf32, #tpu.memory_space<vmem>>, %arg4: memref<3x2x32xf32, #tpu.memory_space<vmem>>, %arg5: memref<1x32xf32, #tpu.memory_space<vmem>>, %arg6: memref<4x32x32xf32, #tpu.memory_space<vmem>>, %arg7: memref<1x1xf32, #tpu.memory_space<vmem>>, %arg8: memref<1x32x1xf32, #tpu.memory_space<vmem>>, %arg9: memref<1x2xf32, #tpu.memory_space<vmem>>, %arg10: memref<3x2x2xf32, #tpu.memory_space<vmem>>, %arg11: memref<1x2xf32, #tpu.memory_space<vmem>>, %arg12: memref<3x2x2xf32, #tpu.memory_space<vmem>>, %arg13: memref<1x4xf32, #tpu.memory_space<vmem>>, %arg14: memref<3x4x4xf32, #tpu.memory_space<vmem>>, %arg15: memref<1x4xf32, #tpu.memory_space<vmem>>, %arg16: memref<3x4x4xf32, #tpu.memory_space<vmem>>, %arg17: memref<1x2xf32, #tpu.memory_space<vmem>>, %arg18: memref<1x3x2xf32, #tpu.memory_space<vmem>>, %arg19: memref<1x2xf32, #tpu.memory_space<vmem>>, %arg20: memref<1x3x2xf32, #tpu.memory_space<vmem>>, %arg21: memref<1x4xf32, #tpu.memory_space<vmem>>, %arg22: memref<1x3x4xf32, #tpu.memory_space<vmem>>, %arg23: memref<1x5x1xf32, #tpu.memory_space<vmem>>, %arg24: memref<32x32xf32, #tpu.memory_space<vmem>>) attributes {dimension_semantics = [#tpu.dimension_semantics<parallel>], iteration_bounds = array<i64: 2>, scalar_prefetch = 0 : i64, scratch_operands = 1 : i64, tpu.core_type = #tpu.core_type<tc>, window_params = [{transform_indices = @transform_0, window_bounds = array<i64: 1, 1>}, {transform_indices = @transform_1, window_bounds = array<i64: 1, 16, 3>}, {pipeline_mode = #tpu.pipeline_mode<synchronous>, transform_indices = @transform_2, window_bounds = array<i64: 1, 32>}, {pipeline_mode = #tpu.pipeline_mode<synchronous>, transform_indices = @transform_3, window_bounds = array<i64: 3, 2, 32>}, {pipeline_mode = #tpu.pipeline_mode<synchronous>, transform_indices = @transform_4, window_bounds = array<i64: 1, 32>}, {pipeline_mode = #tpu.pipeline_mode<synchronous>, transform_indices = @transform_5, window_bounds = array<i64: 4, 32, 32>}, {pipeline_mode = #tpu.pipeline_mode<synchronous>, transform_indices = @transform_6, window_bounds = array<i64: 1, 1>}, {pipeline_mode = #tpu.pipeline_mode<synchronous>, transform_indices = @transform_7, window_bounds = array<i64: 1, 32, 1>}, {pipeline_mode = #tpu.pipeline_mode<synchronous>, transform_indices = @transform_8, window_bounds = array<i64: 1, 2>}, {pipeline_mode = #tpu.pipeline_mode<synchronous>, transform_indices = @transform_9, window_bounds = array<i64: 3, 2, 2>}, {pipeline_mode = #tpu.pipeline_mode<synchronous>, transform_indices = @transform_10, window_bounds = array<i64: 1, 2>}, {pipeline_mode = #tpu.pipeline_mode<synchronous>, transform_indices = @transform_11, window_bounds = array<i64: 3, 2, 2>}, {pipeline_mode = #tpu.pipeline_mode<synchronous>, transform_indices = @transform_12, window_bounds = array<i64: 1, 4>}, {pipeline_mode = #tpu.pipeline_mode<synchronous>, transform_indices = @transform_13, window_bounds = array<i64: 3, 4, 4>}, {pipeline_mode = #tpu.pipeline_mode<synchronous>, transform_indices = @transform_14, window_bounds = array<i64: 1, 4>}, {pipeline_mode = #tpu.pipeline_mode<synchronous>, transform_indices = @transform_15, window_bounds = array<i64: 3, 4, 4>}, {pipeline_mode = #tpu.pipeline_mode<synchronous>, transform_indices = @transform_16, window_bounds = array<i64: 1, 2>}, {pipeline_mode = #tpu.pipeline_mode<synchronous>, transform_indices = @transform_17, window_bounds = array<i64: 1, 3, 2>}, {pipeline_mode = #tpu.pipeline_mode<synchronous>, transform_indices = @transform_18, window_bounds = array<i64: 1, 2>}, {pipeline_mode = #tpu.pipeline_mode<synchronous>, transform_indices = @transform_19, window_bounds = array<i64: 1, 3, 2>}, {pipeline_mode = #tpu.pipeline_mode<synchronous>, transform_indices = @transform_20, window_bounds = array<i64: 1, 4>}, {pipeline_mode = #tpu.pipeline_mode<synchronous>, transform_indices = @transform_21, window_bounds = array<i64: 1, 3, 4>}, {transform_indices = @transform_22, window_bounds = array<i64: 1, 5, 1>}]} {
    %c0 = arith.constant 0 : index
    %c0_0 = arith.constant 0 : index
    %c0_1 = arith.constant 0 : index
    %0 = vector.load %arg2[%c0, %c0_0, %c0_1] : memref<1x16x3xf32, #tpu.memory_space<vmem>>, vector<1x16x3xf32>
    %1 = vector.shape_cast %0 : vector<1x16x3xf32> to vector<16x3xf32>
    %c0_2 = arith.constant 0 : index
    %c0_3 = arith.constant 0 : index
    %c0_4 = arith.constant 0 : index
    %2 = vector.load %arg22[%c0_2, %c0_3, %c0_4] : memref<1x3x4xf32, #tpu.memory_space<vmem>>, vector<1x3x4xf32>
    %3 = vector.shape_cast %2 : vector<1x3x4xf32> to vector<3x4xf32>
    %cst = arith.constant dense<0.000000e+00> : vector<16x4xf32>
    %4 = tpu.matmul %1, %3, %cst {dimension_numbers = #tpu.dot_dimension_numbers<[1], [0], [0], [1], [0, 0, 1, 1], [], []>} : vector<16x3xf32>, vector<3x4xf32>, vector<16x4xf32> -> vector<16x4xf32>
    %c0_5 = arith.constant 0 : index
    %c0_6 = arith.constant 0 : index
    %5 = vector.load %arg21[%c0_5, %c0_6] : memref<1x4xf32, #tpu.memory_space<vmem>>, vector<1x4xf32>
    %6 = vector.broadcast %5 : vector<1x4xf32> to vector<16x4xf32>
    %7 = arith.addf %4, %6 : vector<16x4xf32>
    %8 = tpu.iota {dimensions = array<i32: 0>} : vector<8x16xi32>
    %9 = tpu.iota {dimensions = array<i32: 1>} : vector<8x16xi32>
    %c2_i32 = arith.constant 2 : i32
    %10 = vector.broadcast %c2_i32 : i32 to vector<8x16xi32>
    %11 = arith.muli %10, %8 : vector<8x16xi32>
    %12 = arith.cmpi eq, %9, %11 : vector<8x16xi32>
    %c2_i32_7 = arith.constant 2 : i32
    %13 = vector.broadcast %c2_i32_7 : i32 to vector<8x16xi32>
    %14 = arith.muli %13, %8 : vector<8x16xi32>
    %c1_i32 = arith.constant 1 : i32
    %15 = vector.broadcast %c1_i32 : i32 to vector<8x16xi32>
    %16 = arith.addi %14, %15 : vector<8x16xi32>
    %17 = arith.cmpi eq, %9, %16 : vector<8x16xi32>
    %18 = arith.ori %12, %17 : vector<8x16xi1>
    %19 = arith.extui %18 : vector<8x16xi1> to vector<8x16xi32>
    %20 = arith.sitofp %19 : vector<8x16xi32> to vector<8x16xf32>
    %cst_8 = arith.constant 5.000000e-01 : f32
    %21 = vector.broadcast %cst_8 : f32 to vector<8x16xf32>
    %22 = arith.mulf %20, %21 : vector<8x16xf32>
    %cst_9 = arith.constant dense<0.000000e+00> : vector<8x3xf32>
    %23 = tpu.matmul %22, %1, %cst_9 {dimension_numbers = #tpu.dot_dimension_numbers<[1], [0], [0], [1], [0, 0, 1, 1], [], []>} : vector<8x16xf32>, vector<16x3xf32>, vector<8x3xf32> -> vector<8x3xf32>
    %cst_10 = arith.constant 0.000000e+00 : f32
    %24 = vector.broadcast %cst_10 : f32 to vector<1x4xf32>
    %c7 = arith.constant 7 : index
    %c0_11 = arith.constant 0 : index
    %25 = vector.load %arg24[%c7, %c0_11] : memref<32x32xf32, #tpu.memory_space<vmem>>, vector<1x4xf32>
    tpu.vector_store %arg24[%c7, %c0_11], %24 {strides = array<i32>} : memref<32x32xf32, #tpu.memory_space<vmem>>, vector<1x4xf32>,
    %c24 = arith.constant 24 : index
    %c0_12 = arith.constant 0 : index
    %26 = vector.load %arg24[%c24, %c0_12] : memref<32x32xf32, #tpu.memory_space<vmem>>, vector<1x4xf32>
    tpu.vector_store %arg24[%c24, %c0_12], %24 {strides = array<i32>} : memref<32x32xf32, #tpu.memory_space<vmem>>, vector<1x4xf32>,
    %c8 = arith.constant 8 : index
    %c0_13 = arith.constant 0 : index
    %27 = vector.load %arg24[%c8, %c0_13] : memref<32x32xf32, #tpu.memory_space<vmem>>, vector<16x4xf32>
    tpu.vector_store %arg24[%c8, %c0_13], %7 {strides = array<i32>} : memref<32x32xf32, #tpu.memory_space<vmem>>, vector<16x4xf32>,
    %cst_14 = arith.constant 0.000000e+00 : f32
    %28 = vector.broadcast %cst_14 : f32 to vector<16x4xf32>
    %c7_15 = arith.constant 7 : index
    %c0_16 = arith.constant 0 : index
    %29 = vector.load %arg24[%c7_15, %c0_16] : memref<32x32xf32, #tpu.memory_space<vmem>>, vector<16x4xf32>
    %c0_17 = arith.constant 0 : index
    %c0_18 = arith.constant 0 : index
    %c0_19 = arith.constant 0 : index
    %30 = vector.load %arg14[%c0_17, %c0_18, %c0_19] : memref<3x4x4xf32, #tpu.memory_space<vmem>>, vector<1x4x4xf32>
    %31 = vector.shape_cast %30 : vector<1x4x4xf32> to vector<4x4xf32>
    %cst_20 = arith.constant dense<0.000000e+00> : vector<16x4xf32>
    %32 = tpu.matmul %29, %31, %cst_20 {dimension_numbers = #tpu.dot_dimension_numbers<[1], [0], [0], [1], [0, 0, 1, 1], [], []>} : vector<16x4xf32>, vector<4x4xf32>, vector<16x4xf32> -> vector<16x4xf32>
    %33 = arith.addf %28, %32 : vector<16x4xf32>
    %c8_21 = arith.constant 8 : index
    %c0_22 = arith.constant 0 : index
    %34 = vector.load %arg24[%c8_21, %c0_22] : memref<32x32xf32, #tpu.memory_space<vmem>>, vector<16x4xf32>
    %c1 = arith.constant 1 : index
    %c0_23 = arith.constant 0 : index
    %c0_24 = arith.constant 0 : index
    %35 = vector.load %arg14[%c1, %c0_23, %c0_24] : memref<3x4x4xf32, #tpu.memory_space<vmem>>, vector<1x4x4xf32>
    %36 = vector.shape_cast %35 : vector<1x4x4xf32> to vector<4x4xf32>
    %cst_25 = arith.constant dense<0.000000e+00> : vector<16x4xf32>
    %37 = tpu.matmul %34, %36, %cst_25 {dimension_numbers = #tpu.dot_dimension_numbers<[1], [0], [0], [1], [0, 0, 1, 1], [], []>} : vector<16x4xf32>, vector<4x4xf32>, vector<16x4xf32> -> vector<16x4xf32>
    %38 = arith.addf %33, %37 : vector<16x4xf32>
    %c9 = arith.constant 9 : index
    %c0_26 = arith.constant 0 : index
    %39 = vector.load %arg24[%c9, %c0_26] : memref<32x32xf32, #tpu.memory_space<vmem>>, vector<16x4xf32>
    %c2 = arith.constant 2 : index
    %c0_27 = arith.constant 0 : index
    %c0_28 = arith.constant 0 : index
    %40 = vector.load %arg14[%c2, %c0_27, %c0_28] : memref<3x4x4xf32, #tpu.memory_space<vmem>>, vector<1x4x4xf32>
    %41 = vector.shape_cast %40 : vector<1x4x4xf32> to vector<4x4xf32>
    %cst_29 = arith.constant dense<0.000000e+00> : vector<16x4xf32>
    %42 = tpu.matmul %39, %41, %cst_29 {dimension_numbers = #tpu.dot_dimension_numbers<[1], [0], [0], [1], [0, 0, 1, 1], [], []>} : vector<16x4xf32>, vector<4x4xf32>, vector<16x4xf32> -> vector<16x4xf32>
    %43 = arith.addf %38, %42 : vector<16x4xf32>
    %c0_30 = arith.constant 0 : index
    %c0_31 = arith.constant 0 : index
    %44 = vector.load %arg13[%c0_30, %c0_31] : memref<1x4xf32, #tpu.memory_space<vmem>>, vector<1x4xf32>
    %45 = vector.broadcast %44 : vector<1x4xf32> to vector<16x4xf32>
    %46 = arith.addf %43, %45 : vector<16x4xf32>
    %cst_32 = arith.constant 0.000000e+00 : f32
    %47 = vector.broadcast %cst_32 : f32 to vector<16x4xf32>
    %48 = arith.cmpf oge, %46, %47 : vector<16x4xf32>
    %cst_33 = arith.constant 2.000000e-01 : f32
    %49 = vector.broadcast %cst_33 : f32 to vector<16x4xf32>
    %50 = arith.mulf %49, %46 : vector<16x4xf32>
    %51 = arith.select %48, %46, %50 : vector<16x4xi1>, vector<16x4xf32>
    %cst_34 = arith.constant 0.000000e+00 : f32
    %52 = vector.broadcast %cst_34 : f32 to vector<1x4xf32>
    %c7_35 = arith.constant 7 : index
    %c0_36 = arith.constant 0 : index
    %53 = vector.load %arg24[%c7_35, %c0_36] : memref<32x32xf32, #tpu.memory_space<vmem>>, vector<1x4xf32>
    tpu.vector_store %arg24[%c7_35, %c0_36], %52 {strides = array<i32>} : memref<32x32xf32, #tpu.memory_space<vmem>>, vector<1x4xf32>,
    %c24_37 = arith.constant 24 : index
    %c0_38 = arith.constant 0 : index
    %54 = vector.load %arg24[%c24_37, %c0_38] : memref<32x32xf32, #tpu.memory_space<vmem>>, vector<1x4xf32>
    tpu.vector_store %arg24[%c24_37, %c0_38], %52 {strides = array<i32>} : memref<32x32xf32, #tpu.memory_space<vmem>>, vector<1x4xf32>,
    %c8_39 = arith.constant 8 : index
    %c0_40 = arith.constant 0 : index
    %55 = vector.load %arg24[%c8_39, %c0_40] : memref<32x32xf32, #tpu.memory_space<vmem>>, vector<16x4xf32>
    tpu.vector_store %arg24[%c8_39, %c0_40], %51 {strides = array<i32>} : memref<32x32xf32, #tpu.memory_space<vmem>>, vector<16x4xf32>,
    %c0_41 = arith.constant 0 : index
    %c0_42 = arith.constant 0 : index
    %c0_43 = arith.constant 0 : index
    %56 = vector.load %arg20[%c0_41, %c0_42, %c0_43] : memref<1x3x2xf32, #tpu.memory_space<vmem>>, vector<1x3x2xf32>
    %57 = vector.shape_cast %56 : vector<1x3x2xf32> to vector<3x2xf32>
    %cst_44 = arith.constant dense<0.000000e+00> : vector<8x2xf32>
    %58 = tpu.matmul %23, %57, %cst_44 {dimension_numbers = #tpu.dot_dimension_numbers<[1], [0], [0], [1], [0, 0, 1, 1], [], []>} : vector<8x3xf32>, vector<3x2xf32>, vector<8x2xf32> -> vector<8x2xf32>
    %c0_45 = arith.constant 0 : index
    %c0_46 = arith.constant 0 : index
    %59 = vector.load %arg19[%c0_45, %c0_46] : memref<1x2xf32, #tpu.memory_space<vmem>>, vector<1x2xf32>
    %60 = vector.broadcast %59 : vector<1x2xf32> to vector<8x2xf32>
    %61 = arith.addf %58, %60 : vector<8x2xf32>
    %62 = tpu.iota {dimensions = array<i32: 0>} : vector<4x8xi32>
    %63 = tpu.iota {dimensions = array<i32: 1>} : vector<4x8xi32>
    %c2_i32_47 = arith.constant 2 : i32
    %64 = vector.broadcast %c2_i32_47 : i32 to vector<4x8xi32>
    %65 = arith.muli %64, %62 : vector<4x8xi32>
    %66 = arith.cmpi eq, %63, %65 : vector<4x8xi32>
    %c2_i32_48 = arith.constant 2 : i32
    %67 = vector.broadcast %c2_i32_48 : i32 to vector<4x8xi32>
    %68 = arith.muli %67, %62 : vector<4x8xi32>
    %c1_i32_49 = arith.constant 1 : i32
    %69 = vector.broadcast %c1_i32_49 : i32 to vector<4x8xi32>
    %70 = arith.addi %68, %69 : vector<4x8xi32>
    %71 = arith.cmpi eq, %63, %70 : vector<4x8xi32>
    %72 = arith.ori %66, %71 : vector<4x8xi1>
    %73 = arith.extui %72 : vector<4x8xi1> to vector<4x8xi32>
    %74 = arith.sitofp %73 : vector<4x8xi32> to vector<4x8xf32>
    %cst_50 = arith.constant 5.000000e-01 : f32
    %75 = vector.broadcast %cst_50 : f32 to vector<4x8xf32>
    %76 = arith.mulf %74, %75 : vector<4x8xf32>
    %cst_51 = arith.constant dense<0.000000e+00> : vector<4x3xf32>
    %77 = tpu.matmul %76, %23, %cst_51 {dimension_numbers = #tpu.dot_dimension_numbers<[1], [0], [0], [1], [0, 0, 1, 1], [], []>} : vector<4x8xf32>, vector<8x3xf32>, vector<4x3xf32> -> vector<4x3xf32>
    %cst_52 = arith.constant 0.000000e+00 : f32
    %78 = vector.broadcast %cst_52 : f32 to vector<1x2xf32>
    %c7_53 = arith.constant 7 : index
    %c0_54 = arith.constant 0 : index
    %79 = vector.load %arg24[%c7_53, %c0_54] : memref<32x32xf32, #tpu.memory_space<vmem>>, vector<1x2xf32>
    tpu.vector_store %arg24[%c7_53, %c0_54], %78 {strides = array<i32>} : memref<32x32xf32, #tpu.memory_space<vmem>>, vector<1x2xf32>,
    %c16 = arith.constant 16 : index
    %c0_55 = arith.constant 0 : index
    %80 = vector.load %arg24[%c16, %c0_55] : memref<32x32xf32, #tpu.memory_space<vmem>>, vector<1x2xf32>
    tpu.vector_store %arg24[%c16, %c0_55], %78 {strides = array<i32>} : memref<32x32xf32, #tpu.memory_space<vmem>>, vector<1x2xf32>,
    %c8_56 = arith.constant 8 : index
    %c0_57 = arith.constant 0 : index
    %81 = vector.load %arg24[%c8_56, %c0_57] : memref<32x32xf32, #tpu.memory_space<vmem>>, vector<8x2xf32>
    tpu.vector_store %arg24[%c8_56, %c0_57], %61 {strides = array<i32>} : memref<32x32xf32, #tpu.memory_space<vmem>>, vector<8x2xf32>,
    %cst_58 = arith.constant 0.000000e+00 : f32
    %82 = vector.broadcast %cst_58 : f32 to vector<8x2xf32>
    %c7_59 = arith.constant 7 : index
    %c0_60 = arith.constant 0 : index
    %83 = vector.load %arg24[%c7_59, %c0_60] : memref<32x32xf32, #tpu.memory_space<vmem>>, vector<8x2xf32>
    %c0_61 = arith.constant 0 : index
    %c0_62 = arith.constant 0 : index
    %c0_63 = arith.constant 0 : index
    %84 = vector.load %arg10[%c0_61, %c0_62, %c0_63] : memref<3x2x2xf32, #tpu.memory_space<vmem>>, vector<1x2x2xf32>
    %85 = vector.shape_cast %84 : vector<1x2x2xf32> to vector<2x2xf32>
    %cst_64 = arith.constant dense<0.000000e+00> : vector<8x2xf32>
    %86 = tpu.matmul %83, %85, %cst_64 {dimension_numbers = #tpu.dot_dimension_numbers<[1], [0], [0], [1], [0, 0, 1, 1], [], []>} : vector<8x2xf32>, vector<2x2xf32>, vector<8x2xf32> -> vector<8x2xf32>
    %87 = arith.addf %82, %86 : vector<8x2xf32>
    %c8_65 = arith.constant 8 : index
    %c0_66 = arith.constant 0 : index
    %88 = vector.load %arg24[%c8_65, %c0_66] : memref<32x32xf32, #tpu.memory_space<vmem>>, vector<8x2xf32>
    %c1_67 = arith.constant 1 : index
    %c0_68 = arith.constant 0 : index
    %c0_69 = arith.constant 0 : index
    %89 = vector.load %arg10[%c1_67, %c0_68, %c0_69] : memref<3x2x2xf32, #tpu.memory_space<vmem>>, vector<1x2x2xf32>
    %90 = vector.shape_cast %89 : vector<1x2x2xf32> to vector<2x2xf32>
    %cst_70 = arith.constant dense<0.000000e+00> : vector<8x2xf32>
    %91 = tpu.matmul %88, %90, %cst_70 {dimension_numbers = #tpu.dot_dimension_numbers<[1], [0], [0], [1], [0, 0, 1, 1], [], []>} : vector<8x2xf32>, vector<2x2xf32>, vector<8x2xf32> -> vector<8x2xf32>
    %92 = arith.addf %87, %91 : vector<8x2xf32>
    %c9_71 = arith.constant 9 : index
    %c0_72 = arith.constant 0 : index
    %93 = vector.load %arg24[%c9_71, %c0_72] : memref<32x32xf32, #tpu.memory_space<vmem>>, vector<8x2xf32>
    %c2_73 = arith.constant 2 : index
    %c0_74 = arith.constant 0 : index
    %c0_75 = arith.constant 0 : index
    %94 = vector.load %arg10[%c2_73, %c0_74, %c0_75] : memref<3x2x2xf32, #tpu.memory_space<vmem>>, vector<1x2x2xf32>
    %95 = vector.shape_cast %94 : vector<1x2x2xf32> to vector<2x2xf32>
    %cst_76 = arith.constant dense<0.000000e+00> : vector<8x2xf32>
    %96 = tpu.matmul %93, %95, %cst_76 {dimension_numbers = #tpu.dot_dimension_numbers<[1], [0], [0], [1], [0, 0, 1, 1], [], []>} : vector<8x2xf32>, vector<2x2xf32>, vector<8x2xf32> -> vector<8x2xf32>
    %97 = arith.addf %92, %96 : vector<8x2xf32>
    %c0_77 = arith.constant 0 : index
    %c0_78 = arith.constant 0 : index
    %98 = vector.load %arg9[%c0_77, %c0_78] : memref<1x2xf32, #tpu.memory_space<vmem>>, vector<1x2xf32>
    %99 = vector.broadcast %98 : vector<1x2xf32> to vector<8x2xf32>
    %100 = arith.addf %97, %99 : vector<8x2xf32>
    %cst_79 = arith.constant 0.000000e+00 : f32
    %101 = vector.broadcast %cst_79 : f32 to vector<8x2xf32>
    %102 = arith.cmpf oge, %100, %101 : vector<8x2xf32>
    %cst_80 = arith.constant 2.000000e-01 : f32
    %103 = vector.broadcast %cst_80 : f32 to vector<8x2xf32>
    %104 = arith.mulf %103, %100 : vector<8x2xf32>
    %105 = arith.select %102, %100, %104 : vector<8x2xi1>, vector<8x2xf32>
    %cst_81 = arith.constant 0.000000e+00 : f32
    %106 = vector.broadcast %cst_81 : f32 to vector<1x2xf32>
    %c7_82 = arith.constant 7 : index
    %c0_83 = arith.constant 0 : index
    %107 = vector.load %arg24[%c7_82, %c0_83] : memref<32x32xf32, #tpu.memory_space<vmem>>, vector<1x2xf32>
    tpu.vector_store %arg24[%c7_82, %c0_83], %106 {strides = array<i32>} : memref<32x32xf32, #tpu.memory_space<vmem>>, vector<1x2xf32>,
    %c16_84 = arith.constant 16 : index
    %c0_85 = arith.constant 0 : index
    %108 = vector.load %arg24[%c16_84, %c0_85] : memref<32x32xf32, #tpu.memory_space<vmem>>, vector<1x2xf32>
    tpu.vector_store %arg24[%c16_84, %c0_85], %106 {strides = array<i32>} : memref<32x32xf32, #tpu.memory_space<vmem>>, vector<1x2xf32>,
    %c8_86 = arith.constant 8 : index
    %c0_87 = arith.constant 0 : index
    %109 = vector.load %arg24[%c8_86, %c0_87] : memref<32x32xf32, #tpu.memory_space<vmem>>, vector<8x2xf32>
    tpu.vector_store %arg24[%c8_86, %c0_87], %105 {strides = array<i32>} : memref<32x32xf32, #tpu.memory_space<vmem>>, vector<8x2xf32>,
    %cst_88 = arith.constant 0.000000e+00 : f32
    %110 = vector.broadcast %cst_88 : f32 to vector<8x2xf32>
    %c7_89 = arith.constant 7 : index
    %c0_90 = arith.constant 0 : index
    %111 = vector.load %arg24[%c7_89, %c0_90] : memref<32x32xf32, #tpu.memory_space<vmem>>, vector<8x2xf32>
    %c0_91 = arith.constant 0 : index
    %c0_92 = arith.constant 0 : index
    %c0_93 = arith.constant 0 : index
    %112 = vector.load %arg12[%c0_91, %c0_92, %c0_93] : memref<3x2x2xf32, #tpu.memory_space<vmem>>, vector<1x2x2xf32>
    %113 = vector.shape_cast %112 : vector<1x2x2xf32> to vector<2x2xf32>
    %cst_94 = arith.constant dense<0.000000e+00> : vector<8x2xf32>
    %114 = tpu.matmul %111, %113, %cst_94 {dimension_numbers = #tpu.dot_dimension_numbers<[1], [0], [0], [1], [0, 0, 1, 1], [], []>} : vector<8x2xf32>, vector<2x2xf32>, vector<8x2xf32> -> vector<8x2xf32>
    %115 = arith.addf %110, %114 : vector<8x2xf32>
    %c8_95 = arith.constant 8 : index
    %c0_96 = arith.constant 0 : index
    %116 = vector.load %arg24[%c8_95, %c0_96] : memref<32x32xf32, #tpu.memory_space<vmem>>, vector<8x2xf32>
    %c1_97 = arith.constant 1 : index
    %c0_98 = arith.constant 0 : index
    %c0_99 = arith.constant 0 : index
    %117 = vector.load %arg12[%c1_97, %c0_98, %c0_99] : memref<3x2x2xf32, #tpu.memory_space<vmem>>, vector<1x2x2xf32>
    %118 = vector.shape_cast %117 : vector<1x2x2xf32> to vector<2x2xf32>
    %cst_100 = arith.constant dense<0.000000e+00> : vector<8x2xf32>
    %119 = tpu.matmul %116, %118, %cst_100 {dimension_numbers = #tpu.dot_dimension_numbers<[1], [0], [0], [1], [0, 0, 1, 1], [], []>} : vector<8x2xf32>, vector<2x2xf32>, vector<8x2xf32> -> vector<8x2xf32>
    %120 = arith.addf %115, %119 : vector<8x2xf32>
    %c9_101 = arith.constant 9 : index
    %c0_102 = arith.constant 0 : index
    %121 = vector.load %arg24[%c9_101, %c0_102] : memref<32x32xf32, #tpu.memory_space<vmem>>, vector<8x2xf32>
    %c2_103 = arith.constant 2 : index
    %c0_104 = arith.constant 0 : index
    %c0_105 = arith.constant 0 : index
    %122 = vector.load %arg12[%c2_103, %c0_104, %c0_105] : memref<3x2x2xf32, #tpu.memory_space<vmem>>, vector<1x2x2xf32>
    %123 = vector.shape_cast %122 : vector<1x2x2xf32> to vector<2x2xf32>
    %cst_106 = arith.constant dense<0.000000e+00> : vector<8x2xf32>
    %124 = tpu.matmul %121, %123, %cst_106 {dimension_numbers = #tpu.dot_dimension_numbers<[1], [0], [0], [1], [0, 0, 1, 1], [], []>} : vector<8x2xf32>, vector<2x2xf32>, vector<8x2xf32> -> vector<8x2xf32>
    %125 = arith.addf %120, %124 : vector<8x2xf32>
    %c0_107 = arith.constant 0 : index
    %c0_108 = arith.constant 0 : index
    %126 = vector.load %arg11[%c0_107, %c0_108] : memref<1x2xf32, #tpu.memory_space<vmem>>, vector<1x2xf32>
    %127 = vector.broadcast %126 : vector<1x2xf32> to vector<8x2xf32>
    %128 = arith.addf %125, %127 : vector<8x2xf32>
    %cst_109 = arith.constant 0.000000e+00 : f32
    %129 = vector.broadcast %cst_109 : f32 to vector<8x2xf32>
    %130 = arith.cmpf oge, %128, %129 : vector<8x2xf32>
    %cst_110 = arith.constant 2.000000e-01 : f32
    %131 = vector.broadcast %cst_110 : f32 to vector<8x2xf32>
    %132 = arith.mulf %131, %128 : vector<8x2xf32>
    %133 = arith.select %130, %128, %132 : vector<8x2xi1>, vector<8x2xf32>
    %cst_111 = arith.constant 0.000000e+00 : f32
    %134 = vector.broadcast %cst_111 : f32 to vector<8x2xf32>
    %135 = arith.cmpf oge, %133, %134 : vector<8x2xf32>
    %cst_112 = arith.constant 2.000000e-01 : f32
    %136 = vector.broadcast %cst_112 : f32 to vector<8x2xf32>
    %137 = arith.mulf %136, %133 : vector<8x2xf32>
    %138 = arith.select %135, %133, %137 : vector<8x2xi1>, vector<8x2xf32>
    %cst_113 = arith.constant 0.000000e+00 : f32
    %139 = vector.broadcast %cst_113 : f32 to vector<1x2xf32>
    %c7_114 = arith.constant 7 : index
    %c0_115 = arith.constant 0 : index
    %140 = vector.load %arg24[%c7_114, %c0_115] : memref<32x32xf32, #tpu.memory_space<vmem>>, vector<1x2xf32>
    tpu.vector_store %arg24[%c7_114, %c0_115], %139 {strides = array<i32>} : memref<32x32xf32, #tpu.memory_space<vmem>>, vector<1x2xf32>,
    %c16_116 = arith.constant 16 : index
    %c0_117 = arith.constant 0 : index
    %141 = vector.load %arg24[%c16_116, %c0_117] : memref<32x32xf32, #tpu.memory_space<vmem>>, vector<1x2xf32>
    tpu.vector_store %arg24[%c16_116, %c0_117], %139 {strides = array<i32>} : memref<32x32xf32, #tpu.memory_space<vmem>>, vector<1x2xf32>,
    %c8_118 = arith.constant 8 : index
    %c0_119 = arith.constant 0 : index
    %142 = vector.load %arg24[%c8_118, %c0_119] : memref<32x32xf32, #tpu.memory_space<vmem>>, vector<8x2xf32>
    tpu.vector_store %arg24[%c8_118, %c0_119], %138 {strides = array<i32>} : memref<32x32xf32, #tpu.memory_space<vmem>>, vector<8x2xf32>,
    %cst_120 = arith.constant 0.000000e+00 : f32
    %143 = vector.broadcast %cst_120 : f32 to vector<8x32xf32>
    %c7_121 = arith.constant 7 : index
    %c0_122 = arith.constant 0 : index
    %144 = vector.load %arg24[%c7_121, %c0_122] : memref<32x32xf32, #tpu.memory_space<vmem>>, vector<8x2xf32>
    %c0_123 = arith.constant 0 : index
    %c0_124 = arith.constant 0 : index
    %c0_125 = arith.constant 0 : index
    %145 = vector.load %arg4[%c0_123, %c0_124, %c0_125] : memref<3x2x32xf32, #tpu.memory_space<vmem>>, vector<1x2x32xf32>
    %146 = vector.shape_cast %145 : vector<1x2x32xf32> to vector<2x32xf32>
    %cst_126 = arith.constant dense<0.000000e+00> : vector<8x32xf32>
    %147 = tpu.matmul %144, %146, %cst_126 {dimension_numbers = #tpu.dot_dimension_numbers<[1], [0], [0], [1], [0, 0, 1, 1], [], []>} : vector<8x2xf32>, vector<2x32xf32>, vector<8x32xf32> -> vector<8x32xf32>
    %148 = arith.addf %143, %147 : vector<8x32xf32>
    %c8_127 = arith.constant 8 : index
    %c0_128 = arith.constant 0 : index
    %149 = vector.load %arg24[%c8_127, %c0_128] : memref<32x32xf32, #tpu.memory_space<vmem>>, vector<8x2xf32>
    %c1_129 = arith.constant 1 : index
    %c0_130 = arith.constant 0 : index
    %c0_131 = arith.constant 0 : index
    %150 = vector.load %arg4[%c1_129, %c0_130, %c0_131] : memref<3x2x32xf32, #tpu.memory_space<vmem>>, vector<1x2x32xf32>
    %151 = vector.shape_cast %150 : vector<1x2x32xf32> to vector<2x32xf32>
    %cst_132 = arith.constant dense<0.000000e+00> : vector<8x32xf32>
    %152 = tpu.matmul %149, %151, %cst_132 {dimension_numbers = #tpu.dot_dimension_numbers<[1], [0], [0], [1], [0, 0, 1, 1], [], []>} : vector<8x2xf32>, vector<2x32xf32>, vector<8x32xf32> -> vector<8x32xf32>
    %153 = arith.addf %148, %152 : vector<8x32xf32>
    %c9_133 = arith.constant 9 : index
    %c0_134 = arith.constant 0 : index
    %154 = vector.load %arg24[%c9_133, %c0_134] : memref<32x32xf32, #tpu.memory_space<vmem>>, vector<8x2xf32>
    %c2_135 = arith.constant 2 : index
    %c0_136 = arith.constant 0 : index
    %c0_137 = arith.constant 0 : index
    %155 = vector.load %arg4[%c2_135, %c0_136, %c0_137] : memref<3x2x32xf32, #tpu.memory_space<vmem>>, vector<1x2x32xf32>
    %156 = vector.shape_cast %155 : vector<1x2x32xf32> to vector<2x32xf32>
    %cst_138 = arith.constant dense<0.000000e+00> : vector<8x32xf32>
    %157 = tpu.matmul %154, %156, %cst_138 {dimension_numbers = #tpu.dot_dimension_numbers<[1], [0], [0], [1], [0, 0, 1, 1], [], []>} : vector<8x2xf32>, vector<2x32xf32>, vector<8x32xf32> -> vector<8x32xf32>
    %158 = arith.addf %153, %157 : vector<8x32xf32>
    %c0_139 = arith.constant 0 : index
    %c0_140 = arith.constant 0 : index
    %159 = vector.load %arg3[%c0_139, %c0_140] : memref<1x32xf32, #tpu.memory_space<vmem>>, vector<1x32xf32>
    %160 = vector.broadcast %159 : vector<1x32xf32> to vector<8x32xf32>
    %161 = arith.addf %158, %160 : vector<8x32xf32>
    %cst_141 = arith.constant 0.000000e+00 : f32
    %162 = vector.broadcast %cst_141 : f32 to vector<8x32xf32>
    %163 = arith.cmpf oge, %161, %162 : vector<8x32xf32>
    %cst_142 = arith.constant 2.000000e-01 : f32
    %164 = vector.broadcast %cst_142 : f32 to vector<8x32xf32>
    %165 = arith.mulf %164, %161 : vector<8x32xf32>
    %166 = arith.select %163, %161, %165 : vector<8x32xi1>, vector<8x32xf32>
    %c8_143 = arith.constant 8 : index
    %c0_144 = arith.constant 0 : index
    %167 = vector.load %arg24[%c8_143, %c0_144] : memref<32x32xf32, #tpu.memory_space<vmem>>, vector<8x32xf32>
    tpu.vector_store %arg24[%c8_143, %c0_144], %166 {strides = array<i32>} : memref<32x32xf32, #tpu.memory_space<vmem>>, vector<8x32xf32>,
    %cst_145 = arith.constant 0.000000e+00 : f32
    %168 = vector.broadcast %cst_145 : f32 to vector<5x32xf32>
    %c8_146 = arith.constant 8 : index
    %c0_147 = arith.constant 0 : index
    %169 = vector.load %arg24[%c8_146, %c0_147] : memref<32x32xf32, #tpu.memory_space<vmem>>, vector<5x32xf32>
    %c0_148 = arith.constant 0 : index
    %c0_149 = arith.constant 0 : index
    %c0_150 = arith.constant 0 : index
    %170 = vector.load %arg6[%c0_148, %c0_149, %c0_150] : memref<4x32x32xf32, #tpu.memory_space<vmem>>, vector<1x32x32xf32>
    %171 = vector.shape_cast %170 : vector<1x32x32xf32> to vector<32x32xf32>
    %cst_151 = arith.constant dense<0.000000e+00> : vector<5x32xf32>
    %172 = tpu.matmul %169, %171, %cst_151 {dimension_numbers = #tpu.dot_dimension_numbers<[1], [0], [0], [1], [0, 0, 1, 1], [], []>} : vector<5x32xf32>, vector<32x32xf32>, vector<5x32xf32> -> vector<5x32xf32>
    %173 = arith.addf %168, %172 : vector<5x32xf32>
    %c9_152 = arith.constant 9 : index
    %c0_153 = arith.constant 0 : index
    %174 = vector.load %arg24[%c9_152, %c0_153] : memref<32x32xf32, #tpu.memory_space<vmem>>, vector<5x32xf32>
    %c1_154 = arith.constant 1 : index
    %c0_155 = arith.constant 0 : index
    %c0_156 = arith.constant 0 : index
    %175 = vector.load %arg6[%c1_154, %c0_155, %c0_156] : memref<4x32x32xf32, #tpu.memory_space<vmem>>, vector<1x32x32xf32>
    %176 = vector.shape_cast %175 : vector<1x32x32xf32> to vector<32x32xf32>
    %cst_157 = arith.constant dense<0.000000e+00> : vector<5x32xf32>
    %177 = tpu.matmul %174, %176, %cst_157 {dimension_numbers = #tpu.dot_dimension_numbers<[1], [0], [0], [1], [0, 0, 1, 1], [], []>} : vector<5x32xf32>, vector<32x32xf32>, vector<5x32xf32> -> vector<5x32xf32>
    %178 = arith.addf %173, %177 : vector<5x32xf32>
    %c10 = arith.constant 10 : index
    %c0_158 = arith.constant 0 : index
    %179 = vector.load %arg24[%c10, %c0_158] : memref<32x32xf32, #tpu.memory_space<vmem>>, vector<5x32xf32>
    %c2_159 = arith.constant 2 : index
    %c0_160 = arith.constant 0 : index
    %c0_161 = arith.constant 0 : index
    %180 = vector.load %arg6[%c2_159, %c0_160, %c0_161] : memref<4x32x32xf32, #tpu.memory_space<vmem>>, vector<1x32x32xf32>
    %181 = vector.shape_cast %180 : vector<1x32x32xf32> to vector<32x32xf32>
    %cst_162 = arith.constant dense<0.000000e+00> : vector<5x32xf32>
    %182 = tpu.matmul %179, %181, %cst_162 {dimension_numbers = #tpu.dot_dimension_numbers<[1], [0], [0], [1], [0, 0, 1, 1], [], []>} : vector<5x32xf32>, vector<32x32xf32>, vector<5x32xf32> -> vector<5x32xf32>
    %183 = arith.addf %178, %182 : vector<5x32xf32>
    %c11 = arith.constant 11 : index
    %c0_163 = arith.constant 0 : index
    %184 = vector.load %arg24[%c11, %c0_163] : memref<32x32xf32, #tpu.memory_space<vmem>>, vector<5x32xf32>
    %c3 = arith.constant 3 : index
    %c0_164 = arith.constant 0 : index
    %c0_165 = arith.constant 0 : index
    %185 = vector.load %arg6[%c3, %c0_164, %c0_165] : memref<4x32x32xf32, #tpu.memory_space<vmem>>, vector<1x32x32xf32>
    %186 = vector.shape_cast %185 : vector<1x32x32xf32> to vector<32x32xf32>
    %cst_166 = arith.constant dense<0.000000e+00> : vector<5x32xf32>
    %187 = tpu.matmul %184, %186, %cst_166 {dimension_numbers = #tpu.dot_dimension_numbers<[1], [0], [0], [1], [0, 0, 1, 1], [], []>} : vector<5x32xf32>, vector<32x32xf32>, vector<5x32xf32> -> vector<5x32xf32>
    %188 = arith.addf %183, %187 : vector<5x32xf32>
    %c0_167 = arith.constant 0 : index
    %c0_168 = arith.constant 0 : index
    %189 = vector.load %arg5[%c0_167, %c0_168] : memref<1x32xf32, #tpu.memory_space<vmem>>, vector<1x32xf32>
    %190 = vector.broadcast %189 : vector<1x32xf32> to vector<5x32xf32>
    %191 = arith.addf %188, %190 : vector<5x32xf32>
    %cst_169 = arith.constant 0.000000e+00 : f32
    %192 = vector.broadcast %cst_169 : f32 to vector<5x32xf32>
    %193 = arith.cmpf oge, %191, %192 : vector<5x32xf32>
    %cst_170 = arith.constant 2.000000e-01 : f32
    %194 = vector.broadcast %cst_170 : f32 to vector<5x32xf32>
    %195 = arith.mulf %194, %191 : vector<5x32xf32>
    %196 = arith.select %193, %191, %195 : vector<5x32xi1>, vector<5x32xf32>
    %c0_171 = arith.constant 0 : index
    %c0_172 = arith.constant 0 : index
    %c0_173 = arith.constant 0 : index
    %197 = vector.load %arg8[%c0_171, %c0_172, %c0_173] : memref<1x32x1xf32, #tpu.memory_space<vmem>>, vector<1x32x1xf32>
    %198 = vector.shape_cast %197 : vector<1x32x1xf32> to vector<32x1xf32>
    %cst_174 = arith.constant dense<0.000000e+00> : vector<5x1xf32>
    %199 = tpu.matmul %196, %198, %cst_174 {dimension_numbers = #tpu.dot_dimension_numbers<[1], [0], [0], [1], [0, 0, 1, 1], [], []>} : vector<5x32xf32>, vector<32x1xf32>, vector<5x1xf32> -> vector<5x1xf32>
    %c0_175 = arith.constant 0 : index
    %c0_176 = arith.constant 0 : index
    %200 = vector.load %arg7[%c0_175, %c0_176] : memref<1x1xf32, #tpu.memory_space<vmem>>, vector<1x1xf32>
    %201 = vector.broadcast %200 : vector<1x1xf32> to vector<5x1xf32>
    %202 = arith.addf %199, %201 : vector<5x1xf32>
    %c0_177 = arith.constant 0 : index
    %c0_178 = arith.constant 0 : index
    %c0_179 = arith.constant 0 : index
    %203 = vector.load %arg18[%c0_177, %c0_178, %c0_179] : memref<1x3x2xf32, #tpu.memory_space<vmem>>, vector<1x3x2xf32>
    %204 = vector.shape_cast %203 : vector<1x3x2xf32> to vector<3x2xf32>
    %cst_180 = arith.constant dense<0.000000e+00> : vector<4x2xf32>
    %205 = tpu.matmul %77, %204, %cst_180 {dimension_numbers = #tpu.dot_dimension_numbers<[1], [0], [0], [1], [0, 0, 1, 1], [], []>} : vector<4x3xf32>, vector<3x2xf32>, vector<4x2xf32> -> vector<4x2xf32>
    %c0_181 = arith.constant 0 : index
    %c0_182 = arith.constant 0 : index
    %206 = vector.load %arg17[%c0_181, %c0_182] : memref<1x2xf32, #tpu.memory_space<vmem>>, vector<1x2xf32>
    %207 = vector.broadcast %206 : vector<1x2xf32> to vector<4x2xf32>
    %208 = arith.addf %205, %207 : vector<4x2xf32>
    %cst_183 = arith.constant 0.000000e+00 : f32
    %209 = vector.broadcast %cst_183 : f32 to vector<4x2xf32>
    %210 = arith.cmpf oge, %208, %209 : vector<4x2xf32>
    %cst_184 = arith.constant 2.000000e-01 : f32
    %211 = vector.broadcast %cst_184 : f32 to vector<4x2xf32>
    %212 = arith.mulf %211, %208 : vector<4x2xf32>
    %213 = arith.select %210, %208, %212 : vector<4x2xi1>, vector<4x2xf32>
    %cst_185 = arith.constant 0.000000e+00 : f32
    %214 = vector.broadcast %cst_185 : f32 to vector<1x2xf32>
    %c7_186 = arith.constant 7 : index
    %c0_187 = arith.constant 0 : index
    %215 = vector.load %arg24[%c7_186, %c0_187] : memref<32x32xf32, #tpu.memory_space<vmem>>, vector<1x2xf32>
    tpu.vector_store %arg24[%c7_186, %c0_187], %214 {strides = array<i32>} : memref<32x32xf32, #tpu.memory_space<vmem>>, vector<1x2xf32>,
    %c12 = arith.constant 12 : index
    %c0_188 = arith.constant 0 : index
    %216 = vector.load %arg24[%c12, %c0_188] : memref<32x32xf32, #tpu.memory_space<vmem>>, vector<1x2xf32>
    tpu.vector_store %arg24[%c12, %c0_188], %214 {strides = array<i32>} : memref<32x32xf32, #tpu.memory_space<vmem>>, vector<1x2xf32>,
    %c8_189 = arith.constant 8 : index
    %c0_190 = arith.constant 0 : index
    %217 = vector.load %arg24[%c8_189, %c0_190] : memref<32x32xf32, #tpu.memory_space<vmem>>, vector<4x2xf32>
    tpu.vector_store %arg24[%c8_189, %c0_190], %213 {strides = array<i32>} : memref<32x32xf32, #tpu.memory_space<vmem>>, vector<4x2xf32>,
    %cst_191 = arith.constant 0.000000e+00 : f32
    %218 = vector.broadcast %cst_191 : f32 to vector<4x32xf32>
    %c7_192 = arith.constant 7 : index
    %c0_193 = arith.constant 0 : index
    %219 = vector.load %arg24[%c7_192, %c0_193] : memref<32x32xf32, #tpu.memory_space<vmem>>, vector<4x2xf32>
    %c0_194 = arith.constant 0 : index
    %c0_195 = arith.constant 0 : index
    %c0_196 = arith.constant 0 : index
    %220 = vector.load %arg4[%c0_194, %c0_195, %c0_196] : memref<3x2x32xf32, #tpu.memory_space<vmem>>, vector<1x2x32xf32>
    %221 = vector.shape_cast %220 : vector<1x2x32xf32> to vector<2x32xf32>
    %cst_197 = arith.constant dense<0.000000e+00> : vector<4x32xf32>
    %222 = tpu.matmul %219, %221, %cst_197 {dimension_numbers = #tpu.dot_dimension_numbers<[1], [0], [0], [1], [0, 0, 1, 1], [], []>} : vector<4x2xf32>, vector<2x32xf32>, vector<4x32xf32> -> vector<4x32xf32>
    %223 = arith.addf %218, %222 : vector<4x32xf32>
    %c8_198 = arith.constant 8 : index
    %c0_199 = arith.constant 0 : index
    %224 = vector.load %arg24[%c8_198, %c0_199] : memref<32x32xf32, #tpu.memory_space<vmem>>, vector<4x2xf32>
    %c1_200 = arith.constant 1 : index
    %c0_201 = arith.constant 0 : index
    %c0_202 = arith.constant 0 : index
    %225 = vector.load %arg4[%c1_200, %c0_201, %c0_202] : memref<3x2x32xf32, #tpu.memory_space<vmem>>, vector<1x2x32xf32>
    %226 = vector.shape_cast %225 : vector<1x2x32xf32> to vector<2x32xf32>
    %cst_203 = arith.constant dense<0.000000e+00> : vector<4x32xf32>
    %227 = tpu.matmul %224, %226, %cst_203 {dimension_numbers = #tpu.dot_dimension_numbers<[1], [0], [0], [1], [0, 0, 1, 1], [], []>} : vector<4x2xf32>, vector<2x32xf32>, vector<4x32xf32> -> vector<4x32xf32>
    %228 = arith.addf %223, %227 : vector<4x32xf32>
    %c9_204 = arith.constant 9 : index
    %c0_205 = arith.constant 0 : index
    %229 = vector.load %arg24[%c9_204, %c0_205] : memref<32x32xf32, #tpu.memory_space<vmem>>, vector<4x2xf32>
    %c2_206 = arith.constant 2 : index
    %c0_207 = arith.constant 0 : index
    %c0_208 = arith.constant 0 : index
    %230 = vector.load %arg4[%c2_206, %c0_207, %c0_208] : memref<3x2x32xf32, #tpu.memory_space<vmem>>, vector<1x2x32xf32>
    %231 = vector.shape_cast %230 : vector<1x2x32xf32> to vector<2x32xf32>
    %cst_209 = arith.constant dense<0.000000e+00> : vector<4x32xf32>
    %232 = tpu.matmul %229, %231, %cst_209 {dimension_numbers = #tpu.dot_dimension_numbers<[1], [0], [0], [1], [0, 0, 1, 1], [], []>} : vector<4x2xf32>, vector<2x32xf32>, vector<4x32xf32> -> vector<4x32xf32>
    %233 = arith.addf %228, %232 : vector<4x32xf32>
    %c0_210 = arith.constant 0 : index
    %c0_211 = arith.constant 0 : index
    %234 = vector.load %arg3[%c0_210, %c0_211] : memref<1x32xf32, #tpu.memory_space<vmem>>, vector<1x32xf32>
    %235 = vector.broadcast %234 : vector<1x32xf32> to vector<4x32xf32>
    %236 = arith.addf %233, %235 : vector<4x32xf32>
    %cst_212 = arith.constant 0.000000e+00 : f32
    %237 = vector.broadcast %cst_212 : f32 to vector<4x32xf32>
    %238 = arith.cmpf oge, %236, %237 : vector<4x32xf32>
    %cst_213 = arith.constant 2.000000e-01 : f32
    %239 = vector.broadcast %cst_213 : f32 to vector<4x32xf32>
    %240 = arith.mulf %239, %236 : vector<4x32xf32>
    %241 = arith.select %238, %236, %240 : vector<4x32xi1>, vector<4x32xf32>
    %c8_214 = arith.constant 8 : index
    %c0_215 = arith.constant 0 : index
    %242 = vector.load %arg24[%c8_214, %c0_215] : memref<32x32xf32, #tpu.memory_space<vmem>>, vector<4x32xf32>
    tpu.vector_store %arg24[%c8_214, %c0_215], %241 {strides = array<i32>} : memref<32x32xf32, #tpu.memory_space<vmem>>, vector<4x32xf32>,
    %cst_216 = arith.constant 0.000000e+00 : f32
    %243 = vector.broadcast %cst_216 : f32 to vector<1x32xf32>
    %c8_217 = arith.constant 8 : index
    %c0_218 = arith.constant 0 : index
    %244 = vector.load %arg24[%c8_217, %c0_218] : memref<32x32xf32, #tpu.memory_space<vmem>>, vector<1x32xf32>
    %c0_219 = arith.constant 0 : index
    %c0_220 = arith.constant 0 : index
    %c0_221 = arith.constant 0 : index
    %245 = vector.load %arg6[%c0_219, %c0_220, %c0_221] : memref<4x32x32xf32, #tpu.memory_space<vmem>>, vector<1x32x32xf32>
    %246 = vector.shape_cast %245 : vector<1x32x32xf32> to vector<32x32xf32>
    %cst_222 = arith.constant dense<0.000000e+00> : vector<1x32xf32>
    %247 = tpu.matmul %244, %246, %cst_222 {dimension_numbers = #tpu.dot_dimension_numbers<[1], [0], [0], [1], [0, 0, 1, 1], [], []>} : vector<1x32xf32>, vector<32x32xf32>, vector<1x32xf32> -> vector<1x32xf32>
    %248 = arith.addf %243, %247 : vector<1x32xf32>
    %c9_223 = arith.constant 9 : index
    %c0_224 = arith.constant 0 : index
    %249 = vector.load %arg24[%c9_223, %c0_224] : memref<32x32xf32, #tpu.memory_space<vmem>>, vector<1x32xf32>
    %c1_225 = arith.constant 1 : index
    %c0_226 = arith.constant 0 : index
    %c0_227 = arith.constant 0 : index
    %250 = vector.load %arg6[%c1_225, %c0_226, %c0_227] : memref<4x32x32xf32, #tpu.memory_space<vmem>>, vector<1x32x32xf32>
    %251 = vector.shape_cast %250 : vector<1x32x32xf32> to vector<32x32xf32>
    %cst_228 = arith.constant dense<0.000000e+00> : vector<1x32xf32>
    %252 = tpu.matmul %249, %251, %cst_228 {dimension_numbers = #tpu.dot_dimension_numbers<[1], [0], [0], [1], [0, 0, 1, 1], [], []>} : vector<1x32xf32>, vector<32x32xf32>, vector<1x32xf32> -> vector<1x32xf32>
    %253 = arith.addf %248, %252 : vector<1x32xf32>
    %c10_229 = arith.constant 10 : index
    %c0_230 = arith.constant 0 : index
    %254 = vector.load %arg24[%c10_229, %c0_230] : memref<32x32xf32, #tpu.memory_space<vmem>>, vector<1x32xf32>
    %c2_231 = arith.constant 2 : index
    %c0_232 = arith.constant 0 : index
    %c0_233 = arith.constant 0 : index
    %255 = vector.load %arg6[%c2_231, %c0_232, %c0_233] : memref<4x32x32xf32, #tpu.memory_space<vmem>>, vector<1x32x32xf32>
    %256 = vector.shape_cast %255 : vector<1x32x32xf32> to vector<32x32xf32>
    %cst_234 = arith.constant dense<0.000000e+00> : vector<1x32xf32>
    %257 = tpu.matmul %254, %256, %cst_234 {dimension_numbers = #tpu.dot_dimension_numbers<[1], [0], [0], [1], [0, 0, 1, 1], [], []>} : vector<1x32xf32>, vector<32x32xf32>, vector<1x32xf32> -> vector<1x32xf32>
    %258 = arith.addf %253, %257 : vector<1x32xf32>
    %c11_235 = arith.constant 11 : index
    %c0_236 = arith.constant 0 : index
    %259 = vector.load %arg24[%c11_235, %c0_236] : memref<32x32xf32, #tpu.memory_space<vmem>>, vector<1x32xf32>
    %c3_237 = arith.constant 3 : index
    %c0_238 = arith.constant 0 : index
    %c0_239 = arith.constant 0 : index
    %260 = vector.load %arg6[%c3_237, %c0_238, %c0_239] : memref<4x32x32xf32, #tpu.memory_space<vmem>>, vector<1x32x32xf32>
    %261 = vector.shape_cast %260 : vector<1x32x32xf32> to vector<32x32xf32>
    %cst_240 = arith.constant dense<0.000000e+00> : vector<1x32xf32>
    %262 = tpu.matmul %259, %261, %cst_240 {dimension_numbers = #tpu.dot_dimension_numbers<[1], [0], [0], [1], [0, 0, 1, 1], [], []>} : vector<1x32xf32>, vector<32x32xf32>, vector<1x32xf32> -> vector<1x32xf32>
    %263 = arith.addf %258, %262 : vector<1x32xf32>
    %c0_241 = arith.constant 0 : index
    %c0_242 = arith.constant 0 : index
    %264 = vector.load %arg5[%c0_241, %c0_242] : memref<1x32xf32, #tpu.memory_space<vmem>>, vector<1x32xf32>
    %265 = arith.addf %263, %264 : vector<1x32xf32>
    %cst_243 = arith.constant 0.000000e+00 : f32
    %266 = vector.broadcast %cst_243 : f32 to vector<1x32xf32>
    %267 = arith.cmpf oge, %265, %266 : vector<1x32xf32>
    %cst_244 = arith.constant 2.000000e-01 : f32
    %268 = vector.broadcast %cst_244 : f32 to vector<1x32xf32>
    %269 = arith.mulf %268, %265 : vector<1x32xf32>
    %270 = arith.select %267, %265, %269 : vector<1x32xi1>, vector<1x32xf32>
    %c0_245 = arith.constant 0 : index
    %c0_246 = arith.constant 0 : index
    %c0_247 = arith.constant 0 : index
    %271 = vector.load %arg8[%c0_245, %c0_246, %c0_247] : memref<1x32x1xf32, #tpu.memory_space<vmem>>, vector<1x32x1xf32>
    %272 = vector.shape_cast %271 : vector<1x32x1xf32> to vector<32x1xf32>
    %cst_248 = arith.constant dense<0.000000e+00> : vector<1x1xf32>
    %273 = tpu.matmul %270, %272, %cst_248 {dimension_numbers = #tpu.dot_dimension_numbers<[1], [0], [0], [1], [0, 0, 1, 1], [], []>} : vector<1x32xf32>, vector<32x1xf32>, vector<1x1xf32> -> vector<1x1xf32>
    %c0_249 = arith.constant 0 : index
    %c0_250 = arith.constant 0 : index
    %274 = vector.load %arg7[%c0_249, %c0_250] : memref<1x1xf32, #tpu.memory_space<vmem>>, vector<1x1xf32>
    %275 = arith.addf %273, %274 : vector<1x1xf32>
    %c0_251 = arith.constant 0 : index
    %c0_252 = arith.constant 0 : index
    %276 = memref.load %arg1[%c0_251, %c0_252] : memref<1x1xf32, #tpu.memory_space<smem>>
    %277 = vector.broadcast %276 : f32 to vector<1x1xf32>
    %278 = arith.mulf %277, %275 : vector<1x1xf32>
    %cst_253 = arith.constant 1.000000e+00 : f32
    %279 = arith.subf %cst_253, %276 : f32
    %280 = vector.broadcast %279 : f32 to vector<5x1xf32>
    %281 = arith.mulf %280, %202 : vector<5x1xf32>
    %282 = vector.broadcast %278 : vector<1x1xf32> to vector<5x1xf32>
    %283 = arith.addf %282, %281 : vector<5x1xf32>
    %c0_254 = arith.constant 0 : index
    %c0_255 = arith.constant 0 : index
    %c0_256 = arith.constant 0 : index
    %284 = vector.load %arg23[%c0_254, %c0_255, %c0_256] : memref<1x5x1xf32, #tpu.memory_space<vmem>>, vector<1x5x1xf32>
    %285 = vector.shape_cast %284 : vector<1x5x1xf32> to vector<5x1xf32>
    %286 = vector.shape_cast %283 : vector<5x1xf32> to vector<1x5x1xf32>
    tpu.vector_store %arg23[%c0_254, %c0_255, %c0_256], %286 {strides = array<i32>} : memref<1x5x1xf32, #tpu.memory_space<vmem>>, vector<1x5x1xf32>,
    return
  }
  func.func @transform_0(%arg0: i32) -> (i32, i32) {
    %c0_i32 = arith.constant 0 : i32
    %c0_i32_0 = arith.constant 0 : i32
    %c0_i32_1 = arith.constant 0 : i32
    return %c0_i32, %c0_i32_0 : i32, i32
  }
  func.func @transform_1(%arg0: i32) -> (i32, i32, i32) {
    %c0_i32 = arith.constant 0 : i32
    %c0_i32_0 = arith.constant 0 : i32
    %c0_i32_1 = arith.constant 0 : i32
    return %arg0, %c0_i32, %c0_i32_0 : i32, i32, i32
  }
  func.func @transform_2(%arg0: i32) -> (i32, i32) {
    %c0_i32 = arith.constant 0 : i32
    %c0_i32_0 = arith.constant 0 : i32
    %c0_i32_1 = arith.constant 0 : i32
    return %c0_i32, %c0_i32_0 : i32, i32
  }
  func.func @transform_3(%arg0: i32) -> (i32, i32, i32) {
    %c0_i32 = arith.constant 0 : i32
    %c0_i32_0 = arith.constant 0 : i32
    %c0_i32_1 = arith.constant 0 : i32
    %c0_i32_2 = arith.constant 0 : i32
    return %c0_i32, %c0_i32_0, %c0_i32_1 : i32, i32, i32
  }
  func.func @transform_4(%arg0: i32) -> (i32, i32) {
    %c0_i32 = arith.constant 0 : i32
    %c0_i32_0 = arith.constant 0 : i32
    %c0_i32_1 = arith.constant 0 : i32
    return %c0_i32, %c0_i32_0 : i32, i32
  }
  func.func @transform_5(%arg0: i32) -> (i32, i32, i32) {
    %c0_i32 = arith.constant 0 : i32
    %c0_i32_0 = arith.constant 0 : i32
    %c0_i32_1 = arith.constant 0 : i32
    %c0_i32_2 = arith.constant 0 : i32
    return %c0_i32, %c0_i32_0, %c0_i32_1 : i32, i32, i32
  }
  func.func @transform_6(%arg0: i32) -> (i32, i32) {
    %c0_i32 = arith.constant 0 : i32
    %c0_i32_0 = arith.constant 0 : i32
    %c0_i32_1 = arith.constant 0 : i32
    return %c0_i32, %c0_i32_0 : i32, i32
  }
  func.func @transform_7(%arg0: i32) -> (i32, i32, i32) {
    %c0_i32 = arith.constant 0 : i32
    %c0_i32_0 = arith.constant 0 : i32
    %c0_i32_1 = arith.constant 0 : i32
    %c0_i32_2 = arith.constant 0 : i32
    return %c0_i32, %c0_i32_0, %c0_i32_1 : i32, i32, i32
  }
  func.func @transform_8(%arg0: i32) -> (i32, i32) {
    %c0_i32 = arith.constant 0 : i32
    %c0_i32_0 = arith.constant 0 : i32
    %c0_i32_1 = arith.constant 0 : i32
    return %c0_i32, %c0_i32_0 : i32, i32
  }
  func.func @transform_9(%arg0: i32) -> (i32, i32, i32) {
    %c0_i32 = arith.constant 0 : i32
    %c0_i32_0 = arith.constant 0 : i32
    %c0_i32_1 = arith.constant 0 : i32
    %c0_i32_2 = arith.constant 0 : i32
    return %c0_i32, %c0_i32_0, %c0_i32_1 : i32, i32, i32
  }
  func.func @transform_10(%arg0: i32) -> (i32, i32) {
    %c0_i32 = arith.constant 0 : i32
    %c0_i32_0 = arith.constant 0 : i32
    %c0_i32_1 = arith.constant 0 : i32
    return %c0_i32, %c0_i32_0 : i32, i32
  }
  func.func @transform_11(%arg0: i32) -> (i32, i32, i32) {
    %c0_i32 = arith.constant 0 : i32
    %c0_i32_0 = arith.constant 0 : i32
    %c0_i32_1 = arith.constant 0 : i32
    %c0_i32_2 = arith.constant 0 : i32
    return %c0_i32, %c0_i32_0, %c0_i32_1 : i32, i32, i32
  }
  func.func @transform_12(%arg0: i32) -> (i32, i32) {
    %c0_i32 = arith.constant 0 : i32
    %c0_i32_0 = arith.constant 0 : i32
    %c0_i32_1 = arith.constant 0 : i32
    return %c0_i32, %c0_i32_0 : i32, i32
  }
  func.func @transform_13(%arg0: i32) -> (i32, i32, i32) {
    %c0_i32 = arith.constant 0 : i32
    %c0_i32_0 = arith.constant 0 : i32
    %c0_i32_1 = arith.constant 0 : i32
    %c0_i32_2 = arith.constant 0 : i32
    return %c0_i32, %c0_i32_0, %c0_i32_1 : i32, i32, i32
  }
  func.func @transform_14(%arg0: i32) -> (i32, i32) {
    %c0_i32 = arith.constant 0 : i32
    %c0_i32_0 = arith.constant 0 : i32
    %c0_i32_1 = arith.constant 0 : i32
    return %c0_i32, %c0_i32_0 : i32, i32
  }
  func.func @transform_15(%arg0: i32) -> (i32, i32, i32) {
    %c0_i32 = arith.constant 0 : i32
    %c0_i32_0 = arith.constant 0 : i32
    %c0_i32_1 = arith.constant 0 : i32
    %c0_i32_2 = arith.constant 0 : i32
    return %c0_i32, %c0_i32_0, %c0_i32_1 : i32, i32, i32
  }
  func.func @transform_16(%arg0: i32) -> (i32, i32) {
    %c0_i32 = arith.constant 0 : i32
    %c0_i32_0 = arith.constant 0 : i32
    %c0_i32_1 = arith.constant 0 : i32
    return %c0_i32, %c0_i32_0 : i32, i32
  }
  func.func @transform_17(%arg0: i32) -> (i32, i32, i32) {
    %c0_i32 = arith.constant 0 : i32
    %c0_i32_0 = arith.constant 0 : i32
    %c0_i32_1 = arith.constant 0 : i32
    %c0_i32_2 = arith.constant 0 : i32
    return %c0_i32, %c0_i32_0, %c0_i32_1 : i32, i32, i32
  }
  func.func @transform_18(%arg0: i32) -> (i32, i32) {
    %c0_i32 = arith.constant 0 : i32
    %c0_i32_0 = arith.constant 0 : i32
    %c0_i32_1 = arith.constant 0 : i32
    return %c0_i32, %c0_i32_0 : i32, i32
  }
  func.func @transform_19(%arg0: i32) -> (i32, i32, i32) {
    %c0_i32 = arith.constant 0 : i32
    %c0_i32_0 = arith.constant 0 : i32
    %c0_i32_1 = arith.constant 0 : i32
    %c0_i32_2 = arith.constant 0 : i32
    return %c0_i32, %c0_i32_0, %c0_i32_1 : i32, i32, i32
  }
  func.func @transform_20(%arg0: i32) -> (i32, i32) {
    %c0_i32 = arith.constant 0 : i32
    %c0_i32_0 = arith.constant 0 : i32
    %c0_i32_1 = arith.constant 0 : i32
    return %c0_i32, %c0_i32_0 : i32, i32
  }
  func.func @transform_21(%arg0: i32) -> (i32, i32, i32) {
    %c0_i32 = arith.constant 0 : i32
    %c0_i32_0 = arith.constant 0 : i32
    %c0_i32_1 = arith.constant 0 : i32
    %c0_i32_2 = arith.constant 0 : i32
    return %c0_i32, %c0_i32_0, %c0_i32_1 : i32, i32, i32
  }
  func.func @transform_22(%arg0: i32) -> (i32, i32, i32) {
    %c0_i32 = arith.constant 0 : i32
    %c0_i32_0 = arith.constant 0 : i32
    %c0_i32_1 = arith.constant 0 : i32
    return %arg0, %c0_i32, %c0_i32_0 : i32, i32, i32
  }
}

</mosaic_0001>

<bundles_post_ra>
// kernel: discriminator_forward.1
= control target key start
LH: loop header
LB: loop body
LE: loop exit
PB: predicated region body
PF: predicated region fallthrough
CT: control target
= control target key end

     0   :  { %s4298_s0 = inlined_call_operand.<no memory space> [shape: f32[1,1], index: 0, kind: input, shape index: {}]   ;;  %s4299_s1 = inlined_call_operand.vmem [shape: f32[2,16,3], index: 1, kind: input, shape index: {}]   ;;  %s4300_s2 = inlined_call_operand.vmem [shape: f32[1,32], index: 2, kind: input, shape index: {}]   ;;  %s4301_s3 = inlined_call_operand.vmem [shape: f32[3,2,32], index: 3, kind: input, shape index: {}]   ;;  %s4302_s4 = inlined_call_operand.vmem [shape: f32[1,32], index: 4, kind: input, shape index: {}]   ;;  %s4303_s5 = inlined_call_operand.vmem [shape: f32[4,32,32], index: 5, kind: input, shape index: {}]   ;;  %s4304_s6 = inlined_call_operand.<no memory space> [shape: f32[1,1], index: 6, kind: input, shape index: {}]   ;;  %s4305_s7 = inlined_call_operand.vmem [shape: f32[1,32,1], index: 7, kind: input, shape index: {}]   ;;  %s4306_s8 = inlined_call_operand.vmem [shape: f32[1,2], index: 8, kind: input, shape index: {}]   ;;  %s4307_s9 = inlined_call_operand.vmem [shape: f32[3,2,2], index: 9, kind: input, shape index: {}]   ;;  %s4308_s10 = inlined_call_operand.vmem [shape: f32[1,2], index: 10, kind: input, shape index: {}]   ;;  %s4309_s11 = inlined_call_operand.vmem [shape: f32[3,2,2], index: 11, kind: input, shape index: {}]   ;;  %s4310_s12 = inlined_call_operand.vmem [shape: f32[1,4], index: 12, kind: input, shape index: {}]   ;;  %s4311_s13 = inlined_call_operand.vmem [shape: f32[3,4,4], index: 13, kind: input, shape index: {}]   ;;  %s4312_s14 = inlined_call_operand.vmem [shape: f32[1,4], index: 14, kind: input, shape index: {}]   ;;  %s4313_s15 = inlined_call_operand.vmem [shape: f32[3,4,4], index: 15, kind: input, shape index: {}]   ;;  %s4314_s16 = inlined_call_operand.vmem [shape: f32[1,2], index: 16, kind: input, shape index: {}]   ;;  %s4315_s17 = inlined_call_operand.vmem [shape: f32[1,3,2], index: 17, kind: input, shape index: {}]   ;;  %s4316_s18 = inlined_call_operand.vmem [shape: f32[1,2], index: 18, kind: input, shape index: {}]   ;;  %s4317_s19 = inlined_call_operand.vmem [shape: f32[1,3,2], index: 19, kind: input, shape index: {}]   ;;  %s4318_s20 = inlined_call_operand.vmem [shape: f32[1,4], index: 20, kind: input, shape index: {}]   ;;  %s4319_s21 = inlined_call_operand.vmem [shape: f32[1,3,4], index: 21, kind: input, shape index: {}]   ;;  %s4320_s22 = inlined_call_operand.vmem [shape: f32[2,5,1], index: 22, kind: output, shape index: {}]  }
   0x1   :  { %4324 = sst [smem:[#allocation5_spill]] %s4298_s0 }
   0x2   :  { %4325 = sst [smem:[#allocation6_spill]] %s4299_s1 }
   0x3   :  { %4326 = sst [smem:[#allocation7_spill]] %s4300_s2 }
   0x4   :  { %4327 = sst [smem:[#allocation8_spill]] %s4301_s3 }
   0x5   :  { %4328 = sst [smem:[#allocation9_spill]] %s4302_s4  ;;  %s3846_s4 = smov 0  }
   0x6   :  { %4329 = sst [smem:[#allocation10_spill]] %s4303_s5 }
   0x7   :  { %4330 = sst [smem:[#allocation11_spill]] %s4304_s6 }
   0x8   :  { %s4331_s3 = sld [smem:[#allocation5_spill]] }
   0x9   :  { %s4332_s30 = sld [smem:[#allocation11_spill]] }
   0xe   :  { %27 = sst [smem:[#allocation3]] %s4331_s3 }
   0xf   :  { %v28_v0 = vstv %s4332_s30 }
  0x10   :  { %29 = vst [vmem:[#allocation4] sm:$0x1] %v28_v0 }
  0x11 LB: > { %s3290_s0 = sadd.s32 4294967295, %s3721_s4   ;;  %p3294_p0 = scmp.ge.s32.totalorder %s3721_s4, 1  ;;  %s3721_s4 = sphi %s3846_s4, %s35_s4  }
  0x12   : > { %p615_p1 = scmp.lt.s32.totalorder %s3721_s4, 3 }
  0x14   : > { %p616_p2 = pnand %p3294_p0, %p615_p1 }
  0x15   : > { %p676_p3 = scmp.lt.s32.totalorder (!%p616_p2), %s3290_s0, 1  ;;  %s4333_s25 = sld [smem:[#allocation6_spill]] (!%p616_p2) }
  0x16   : > { %619 = sbr.rel (%p616_p2) target bundleno = 1938 (0x792), region = 108  ;;  %s4334_s26 = sld [smem:[#allocation8_spill]] (!%p616_p2) }
  0x17   : > { %s4335_s1 = sld [smem:[#allocation10_spill]] (!%p616_p2) }
  0x18   : > { %s4337_s3 = sld [smem:[#allocation9_spill]] (!%p616_p2) }
  0x1b   : > { %v687_v1 = vld [vmem:[%s4319_s21] sm:$0x7]  ;;  %vm702_vm0 = vcmask 1042432   ;;  %v781_v2 = vlaneseq  ;;  %s4339_s0 = smov (!%p676_p3, %s3290_s0), 1  ;;  %v3723_v5 = vmov 0.0   ;;  %vm695_vm1 = vcmask 23552  }
  0x1c   : > { %3493 = vmatprep.subr.msk.mxu1 %vm702_vm0, %v687_v1  ;;  %s3397_s5 = sshll.u32 %s4339_s0, 4  ;;  %vm3724_vm4 = vmmov 0   ;;  %vm793_vm6 = vcmask 130048   ;;  %vm867_vm7 = vcmask 24576   ;;  %v3304_v12 = vld [vmem:[%s4311_s13 + $0x4] sm:$0xf] }
  0x1d   : > { %3494 = vmatpush3.msk.msra.mxu1 %vm702_vm0, %v687_v1  ;;  %v3861_v3 = vshrl.u32 %v781_v2, 7  ;;  %v784_v4 = vand.u32 127, %v781_v2  ;;  %s680_s14 = scalar_lea.vmem %s4333_s25, %s3397_s5  ;;  %868 = vst.msk [vmem:[#allocation2 + $0x7] sm:$0x1] %vm867_vm7, %v3723_v5  ;;  %869 = vst.msk [vmem:[#allocation2 + $0x18] sm:$0x1] %vm867_vm7, %v3723_v5 }
  0x1e   : > { %3498 = vmatprep.subr.mxu1 %v3723_v5  ;;  %v685_v7 = vld [vmem:[%s680_s14] sm:$0xff]  ;;  %v686_v8 = vld [vmem:[%s680_s14 + $0x8] sm:$0xff]  ;;  %vm886_vm8 = vcmask 1043456   ;;  %vm870_vm9 = vcmask 31744   ;;  %vm1315_vm10 = vcmask 8192   ;;  %vm1242_vm11 = vcmask 64512  }
  0x1f   : > { %v785_v6 = vmul.u32 2, %v3861_v3  ;;  %3495 = vmatprep.mubr.msk.f32.mxu1 %vm695_vm1, %v685_v7  ;;  %v875_v13 = vld [vmem:[%s4311_s13] sm:$0xf]  ;;  %3505 = vmatprep.subr.msk.mxu0 %vm886_vm8, %v3304_v12  ;;  %v3311_v14 = vld [vmem:[%s4311_s13 + $0x8] sm:$0xf]  ;;  %vm1328_vm12 = vcmask 1041408  }
  0x20   : > { %3496 = vmatmul.mubr.msk.f32.vlgmr.msra.gmra.mxu1 %vm695_vm1, %v686_v8  ;;  %3506 = vmatpush3.msk.msra.mxu0 %vm886_vm8, %v3304_v12  ;;  %v3298_v15 = vld [vmem:[%s4318_s20] ss:$0 sm:$0xff]  ;;  %v3320_v29 = vld [vmem:[%s4307_s9 + $0x2] sm:$0x3]  ;;  %vm1318_vm15 = vcmask 15360   ;;  %s4336_s25 = sld [smem:[#allocation7_spill]] }
  0x21   : > { %vm786_vm2 = vcmp.eq.s32.totalorder %v784_v4, %v785_v6  ;;  %v787_v9 = vadd.s32 1, %v785_v6  ;;  %3499 = vmatpush3.msra.mxu1 %v686_v8  ;;  %3502 = vmatprep.mubr.msk.f32.mxu1 %vm3724_vm4, %v3723_v5  ;;  %v1158_v27 = vld [vmem:[%s4317_s19] sm:$0x7]  ;;  %v3325_v52 = vld [vmem:[%s4307_s9 + $0x4] sm:$0x3]  ;;  %s3224_s14 = sld [smem:[#allocation3]] }
  0x22   : > { %3500 = vmatprep.subr.mxu1 %v3723_v5  ;;  %3515 = vmatprep.subr.msk.mxu0 %vm886_vm8, %v3311_v14  ;;  %v1321_v30 = vld [vmem:[%s4307_s9] sm:$0x3]  ;;  %v3329_v58 = vld [vmem:[%s4309_s11 + $0x2] sm:$0x3]  ;;  %s3297_s2 = sshll.u32 %s4339_s0, 3 }
  0x23   : > { %vm788_vm3 = vcmp.eq.s32.totalorder %v784_v4, %v787_v9  ;;  %3501 = vmatpush3.msra.mxu1 %v685_v7  ;;  %v3315_v37 = vld [vmem:[%s4310_s12] ss:$0 sm:$0xff]  ;;  %s684_s29 = scalar_lea.vmem %s4320_s22, %s3297_s2 }
  0x24   : > { %vm789_vm5 = vmor %vm786_vm2, %vm788_vm3  ;;  %3510 = vmatprep.subr.msk.mxu1 %vm886_vm8, %v875_v13  ;;  %v3316_v45 = vld [vmem:[%s4316_s18] ss:$0 sm:$0xff] }
  0x25   : > { %v3302_v10 = vsel %vm789_vm5, 1.0, %v3723_v5  ;;  %v1573_v59 = vld [vmem:[%s4309_s11] sm:$0x3] }
  0x26   : > { %v792_v11 = vmul.f32 0.5, %v3302_v10  ;;  %v3328_v2 = vld [vmem:[%s4306_s8] ss:$0 sm:$0xff]  ;;  %v3334_v10 = vld [vmem:[%s4309_s11 + $0x4] sm:$0x3] }
  0x27   : > { %s3227_s15 = ssub.f32 1.0, %s3224_s14 }
  0x28   : > { %3503 = vmatmul.mubr.msk.f32.vlgmr.msra.gmra.mxu1 %vm793_vm6, %v792_v11 }
  0x29   : > { %3511 = vmatpush3.msk.msra.mxu1 %vm886_vm8, %v875_v13 }
  0x2a   : > { %3520 = vmatprep.subr.mxu1 %v3723_v5 }
  0xe0   : > { %v3497_v16 = vpop.f32.mrf.mxu1 }
  0xe1   : > { %v778_v17 = vadd.f32 %v3497_v16, %v3298_v15 }
  0xe2   : > { %v772_v18 = vpop.f32.mrf.mxu1 }
  0xe3   : > { %872 = vst.msk [vmem:[#allocation2 + $0x10] sm:$0xff] %vm870_vm9, %v778_v17  ;;  %v773_v19 = vadd.f32 %v3298_v15, %v772_v18  ;;  %v1827_v15 = vld [vmem:[%s4334_s26] sm:$0x3] }
  0xe5   : > { %871 = vst.msk [vmem:[#allocation2 + $0x8] sm:$0xff] %vm870_vm9, %v773_v19 }
  0xe8   : > { %v863_v20 = vpop.f32.mrf.mxu1 }
  0xea   : > { %v3504_v21 = vpop.f32.mrf.mxu1  ;;  %v1050_v22 = vld [vmem:[#allocation2 + $0x11] sm:$0xff] }
  0xeb   : > { %1155 = vst.msk [vmem:[#allocation2 + $0x18] sm:$0x1] %vm867_vm7, %v3723_v5  ;;  %v877_v25 = vld [vmem:[#allocation2 + $0x10] sm:$0xff] }
  0xec   : > { %v873_v23 = vld [vmem:[#allocation2 + $0x7] sm:$0xff]  ;;  %v874_v26 = vld [vmem:[#allocation2 + $0xf] sm:$0xff] }
  0xed   : > { %v876_v24 = vld [vmem:[#allocation2 + $0x8] sm:$0xff]  ;;  %1154 = vst.msk [vmem:[#allocation2 + $0x7] sm:$0x1] %vm867_vm7, %v3723_v5  ;;  %3512 = vmatprep.mubr.msk.f32.mxu1 %vm870_vm9, %v873_v23  ;;  %vm2074_vm7 = vcmask 261120  }
  0xee   : > { %3507 = vmatprep.mubr.msk.f32.mxu0 %vm870_vm9, %v876_v24  ;;  %v1049_v28 = vld [vmem:[#allocation2 + $0x9] sm:$0xff]  ;;  %3513 = vmatmul.mubr.msk.f32.vlgmr.msra.gmra.mxu1 %vm870_vm9, %v874_v26  ;;  %1316 = vst.msk [vmem:[#allocation2 + $0x7] sm:$0x1] %vm1315_vm10, %v3723_v5 }
  0xef   : > { %3508 = vmatmul.mubr.msk.f32.vlgmr.msra.gmra.mxu0 %vm870_vm9, %v877_v25  ;;  %3521 = vmatpush3.msk.msra.mxu1 %vm702_vm0, %v1158_v27 }
  0xf0   : > { %3516 = vmatpush3.msk.msra.mxu0 %vm886_vm8, %v3311_v14  ;;  %3517 = vmatprep.mubr.msk.f32.mxu0 %vm870_vm9, %v1049_v28  ;;  %v3338_v14 = vld [vmem:[%s4334_s26 + $0x2] sm:$0x3] }
  0xf1   : > { %3522 = vmatprep.mubr.msk.f32.mxu1 %vm3724_vm4, %v3723_v5  ;;  %3525 = vmatprep.subr.mxu0 %v3723_v5 }
  0xf2   : > { %3530 = vmatprep.subr.mxu1 %v3723_v5  ;;  %3523 = vmatmul.mubr.msk.f32.vlgmr.msra.gmra.mxu1 %vm695_vm1, %v863_v20 }
  0xf3   : > { %3518 = vmatmul.mubr.msk.f32.vlgmr.msra.gmra.mxu0 %vm870_vm9, %v1050_v22  ;;  %3532 = vmatprep.mubr.msk.f32.mxu1 %vm3724_vm4, %v3723_v5  ;;  %v3337_v22 = vld [vmem:[%s4308_s10] ss:$0 sm:$0xff] }
  0xf4   : > { %3526 = vmatpush3.msra.mxu0 %v863_v20  ;;  %3527 = vmatprep.mubr.msk.f32.mxu0 %vm3724_vm4, %v3723_v5 }
  0xf5   : > { %3535 = vmatprep.subr.mxu0 %v3723_v5  ;;  %3531 = vmatpush3.msk.msra.mxu1 %vm1328_vm12, %v3320_v29 }
  0xf6   : > { %3540 = vmatprep.subr.mxu1 %v3723_v5 }
  0xf7   : > { %3528 = vmatmul.mubr.msk.f32.vlgmr.msra.gmra.mxu0 %vm1242_vm11, %v792_v11  ;;  %vm3235_vm11 = vcmask 4096  }
  0xf8   : > { %3536 = vmatpush3.msk.msra.mxu0 %vm1328_vm12, %v1321_v30  ;;  %3537 = vmatprep.mubr.msk.f32.mxu0 %vm3724_vm4, %v3723_v5  ;;  %v3343_v30 = vld [vmem:[%s4334_s26 + $0x4] sm:$0x3] }
  0xf9   : > { %3545 = vmatprep.subr.mxu0 %v3723_v5 }
 0x1ae   : > { %v3514_v32 = vpop.f32.mrf.mxu1 }
 0x1af   : > { %v3509_v31 = vpop.f32.mrf.mxu0 }
 0x1b0   : > { %v1040_v34 = vpop.f32.mrf.mxu1  ;;  %v1046_v35 = vadd.f32 %v3514_v32, %v3509_v31 }
 0x1b1   : > { %v956_v33 = vpop.f32.mrf.mxu0 }
 0x1b2   : > { %v1238_v38 = vpop.f32.mrf.mxu1  ;;  %v1041_v39 = vadd.f32 %v1040_v34, %v956_v33  ;;  %v4034_v34 = vld [vmem:[%s4335_s1 + $0x38] sm:$0xff] }
 0x1b3   : > { %v3519_v36 = vpop.f32.mrf.mxu0  ;;  %v1239_v50 = vadd.f32 %v3316_v45, %v1238_v38  ;;  %v4058_v38 = vld [vmem:[%s4335_s1 + $0x28] sm:$0xff] }
 0x1b4   : > { %v1138_v40 = vadd.f32 %v3519_v36, %v1046_v35  ;;  %v3524_v42 = vpop.f32.mrf.mxu1  ;;  %v4039_v35 = vld [vmem:[%s4335_s1 + $0x18] sm:$0xff]  ;;  %v4044_v36 = vld [vmem:[%s4335_s1 + $0x30] sm:$0xff] }
 0x1b5   : > { %v1128_v41 = vpop.f32.mrf.mxu0 }
 0x1b6   : > { %v1147_v43 = vadd.f32 %v3315_v37, %v1138_v40  ;;  %v1137_v44 = vadd.f32 %v1128_v41, %v1041_v39  ;;  %v4063_v39 = vld [vmem:[%s4335_s1 + $0x8] sm:$0xff]  ;;  %v4072_v40 = vld [vmem:[%s4335_s1 + $0x20] sm:$0xff] }
 0x1b7   : > { %v3967_v56 = vpop.f32.mrf.mxu0  ;;  %v4077_v41 = vld [vmem:[%s4335_s1] sm:$0xff] }
 0x1b8   : > { %vm1149_vm13 = vcmp.ge.f32.partialorder %v1147_v43, 0.0  ;;  %v1151_v46 = vmul.f32 0.2, %v1147_v43  ;;  %v1146_v47 = vadd.f32 %v3315_v37, %v1137_v44  ;;  %v4051_v37 = vld [vmem:[%s4335_s1 + $0x10] sm:$0xff] }
 0x1b9   : > { %v3529_v57 = vpop.f32.mrf.mxu0 }
 0x1ba   : > { %v1153_v48 = vsel %vm1149_vm13, %v1147_v43, %v1151_v46  ;;  %vm1148_vm14 = vcmp.ge.f32.partialorder %v1146_v47, 0.0  ;;  %v1150_v49 = vmul.f32 0.2, %v1146_v47 }
 0x1bb   : > { %1157 = vst.msk [vmem:[#allocation2 + $0x10] sm:$0xff] %vm870_vm9, %v1153_v48  ;;  %v4090_v48 = vld [vmem:[%s4336_s25] ss:$0 sm:$0xff] }
 0x1bc   : > { %1317 = vst.msk [vmem:[#allocation2 + $0x10] sm:$0x1] %vm1315_vm10, %v3723_v5  ;;  %v1152_v51 = vsel %vm1148_vm14, %v1146_v47, %v1150_v49 }
 0x1bd   : > { %1156 = vst.msk [vmem:[#allocation2 + $0x8] sm:$0xff] %vm870_vm9, %v1152_v51 }
 0x1be   : > { %1319 = vst.msk [vmem:[#allocation2 + $0x8] sm:$0xff] %vm1318_vm15, %v1239_v50 }
 0x1c5   : > { %v1322_v53 = vld [vmem:[#allocation2 + $0x8] sm:$0xff] }
 0x1c6   : > { %v1320_v54 = vld [vmem:[#allocation2 + $0x7] sm:$0xff]  ;;  %3533 = vmatmul.mubr.msk.f32.vlgmr.msra.gmra.mxu1 %vm1318_vm15, %v1322_v53 }
 0x1c7   : > { %v1478_v55 = vld [vmem:[#allocation2 + $0x9] sm:$0xff]  ;;  %3538 = vmatmul.mubr.msk.f32.vlgmr.msra.gmra.mxu0 %vm1318_vm15, %v1320_v54  ;;  %1569 = vst.msk [vmem:[#allocation2 + $0x7] sm:$0x1] %vm1315_vm10, %v3723_v5  ;;  %3541 = vmatpush3.msk.msra.mxu1 %vm1328_vm12, %v3325_v52  ;;  %v4097_v54 = vld [vmem:[%s4335_s1 + $0x58] sm:$0xff] }
 0x1c8   : > { %1570 = vst.msk [vmem:[#allocation2 + $0x10] sm:$0x1] %vm1315_vm10, %v3723_v5  ;;  %3542 = vmatprep.mubr.msk.f32.mxu1 %vm3724_vm4, %v3723_v5  ;;  %3550 = vmatprep.subr.mxu1 %v3723_v5 }
 0x1c9   : > { %3547 = vmatprep.mubr.msk.f32.mxu0 %vm3724_vm4, %v3723_v5  ;;  %3546 = vmatpush3.msk.msra.mxu0 %vm1328_vm12, %v3329_v58 }
 0x1ca   : > { %3543 = vmatmul.mubr.msk.f32.vlgmr.msra.gmra.mxu1 %vm1318_vm15, %v1478_v55  ;;  %3555 = vmatprep.subr.mxu0 %v3723_v5  ;;  %v4102_v55 = vld [vmem:[%s4335_s1 + $0x78] sm:$0xff] }
 0x1cb   : > { %3552 = vmatprep.mubr.msk.f32.mxu1 %vm3724_vm4, %v3723_v5  ;;  %3551 = vmatpush3.msk.msra.mxu1 %vm1328_vm12, %v1573_v59  ;;  %v4107_v59 = vld [vmem:[%s4335_s1 + $0x50] sm:$0xff] }
 0x1cc   : > { %3560 = vmatprep.subr.mxu1 %v3723_v5 }
 0x286   : > { %v1398_v60 = vpop.f32.mrf.mxu1 }
 0x287   : > { %v1474_v61 = vpop.f32.mrf.mxu0 }
 0x288   : > { %v3534_v62 = vpop.f32.mrf.mxu1  ;;  %v1475_v0 = vadd.f32 %v1474_v61, %v1398_v60  ;;  %v4114_v60 = vld [vmem:[%s4335_s1 + $0x70] sm:$0xff] }
 0x289   : > { %v3539_v63 = vpop.f32.mrf.mxu0 }
 0x28a   : > { %v1553_v1 = vpop.f32.mrf.mxu1  ;;  %v4125_v63 = vld [vmem:[%s4335_s1 + $0x48] sm:$0xff] }
 0x28b   : > { %v1557_v4 = vadd.f32 %v1553_v1, %v1475_v0  ;;  %v4130_v0 = vld [vmem:[%s4335_s1 + $0x68] sm:$0xff]  ;;  %v4139_v1 = vld [vmem:[%s4335_s1 + $0x40] sm:$0xff] }
 0x28c   : > { %v3544_v6 = vpop.f32.mrf.mxu1 }
 0x28d   : > { %v1565_v7 = vadd.f32 %v3328_v2, %v1557_v4  ;;  %v4146_v2 = vld [vmem:[%s4335_s1 + $0x60] sm:$0xff]  ;;  %v4176_v6 = vld [vmem:[%s4305_s7 + $0x18] sm:$0xff] }
 0x28e   : > { %v2488_v4 = vld [vmem:[%s4315_s17] sm:$0x7] }
 0x28f   : > { %vm1566_vm2 = vcmp.ge.f32.partialorder %v1565_v7, 0.0  ;;  %v1567_v8 = vmul.f32 0.2, %v1565_v7 }
 0x291   : > { %v1568_v9 = vsel %vm1566_vm2, %v1565_v7, %v1567_v8  ;;  %v4183_v7 = vld [vmem:[%s4305_s7 + $0x10] sm:$0xff]  ;;  %v4197_v8 = vld [vmem:[%s4305_s7] sm:$0xff] }
 0x292   : > { %1571 = vst.msk [vmem:[#allocation2 + $0x8] sm:$0xff] %vm1318_vm15, %v1568_v9  ;;  %v3369_v9 = vld [vmem:[%s4334_s26 + $0x2] sm:$0x3] }
 0x299   : > { %v1574_v11 = vld [vmem:[#allocation2 + $0x8] sm:$0xff] }
 0x29a   : > { %v1572_v12 = vld [vmem:[#allocation2 + $0x7] sm:$0xff]  ;;  %3548 = vmatmul.mubr.msk.f32.vlgmr.msra.gmra.mxu0 %vm1318_vm15, %v1574_v11 }
 0x29b   : > { %v1729_v13 = vld [vmem:[#allocation2 + $0x9] sm:$0xff]  ;;  %3553 = vmatmul.mubr.msk.f32.vlgmr.msra.gmra.mxu1 %vm1318_vm15, %v1572_v12  ;;  %1823 = vst.msk [vmem:[#allocation2 + $0x7] sm:$0x1] %vm1315_vm10, %v3723_v5  ;;  %3556 = vmatpush3.msk.msra.mxu0 %vm1328_vm12, %v3334_v10 }
 0x29c   : > { %1824 = vst.msk [vmem:[#allocation2 + $0x10] sm:$0x1] %vm1315_vm10, %v3723_v5  ;;  %3557 = vmatprep.mubr.msk.f32.mxu0 %vm3724_vm4, %v3723_v5  ;;  %3565 = vmatprep.subr.mxu0 %v3723_v5 }
 0x29d   : > { %3562 = vmatprep.mubr.msk.f32.mxu1 %vm3724_vm4, %v3723_v5  ;;  %3561 = vmatpush3.msk.msra.mxu1 %vm1328_vm12, %v3338_v14 }
 0x29e   : > { %3558 = vmatmul.mubr.msk.f32.vlgmr.msra.gmra.mxu0 %vm1318_vm15, %v1729_v13  ;;  %3570 = vmatprep.subr.mxu1 %v3723_v5 }
 0x29f   : > { %3567 = vmatprep.mubr.msk.f32.mxu0 %vm3724_vm4, %v3723_v5  ;;  %3566 = vmatpush3.msk.msra.mxu0 %vm1328_vm12, %v1827_v15 }
 0x2a0   : > { %3575 = vmatprep.subr.mxu0 %v3723_v5 }
 0x35a   : > { %v1649_v16 = vpop.f32.mrf.mxu0 }
 0x35b   : > { %v1725_v17 = vpop.f32.mrf.mxu1 }
 0x35c   : > { %v3549_v18 = vpop.f32.mrf.mxu0  ;;  %v1726_v20 = vadd.f32 %v1725_v17, %v1649_v16 }
 0x35d   : > { %v3554_v19 = vpop.f32.mrf.mxu1  ;;  %v3363_v18 = vld [vmem:[%s4337_s3] ss:$0 sm:$0xff] }
 0x35e   : > { %v1804_v21 = vpop.f32.mrf.mxu0 }
 0x35f   : > { %v1808_v23 = vadd.f32 %v1804_v21, %v1726_v20  ;;  %v3366_v21 = vld [vmem:[%s4314_s16] ss:$0 sm:$0xff] }
 0x360   : > { %v3559_v24 = vpop.f32.mrf.mxu0 }
 0x361   : > { %v1816_v25 = vadd.f32 %v3337_v22, %v1808_v23 }
 0x363   : > { %vm1817_vm3 = vcmp.ge.f32.partialorder %v1816_v25, 0.0  ;;  %v1818_v26 = vmul.f32 0.2, %v1816_v25 }
 0x365   : > { %v1819_v27 = vsel %vm1817_vm3, %v1816_v25, %v1818_v26 }
 0x366   : > { %vm1820_vm5 = vcmp.ge.f32.partialorder %v1819_v27, 0.0  ;;  %v1821_v28 = vmul.f32 0.2, %v1819_v27 }
 0x368   : > { %v1822_v29 = vsel %vm1820_vm5, %v1819_v27, %v1821_v28 }
 0x369   : > { %1825 = vst.msk [vmem:[#allocation2 + $0x8] sm:$0xff] %vm1318_vm15, %v1822_v29  ;;  %v2580_v29 = vld [vmem:[%s4334_s26] sm:$0x3] }
 0x370   : > { %v1828_v31 = vld [vmem:[#allocation2 + $0x8] sm:$0xff] }
 0x371   : > { %v1826_v32 = vld [vmem:[#allocation2 + $0x7] sm:$0xff]  ;;  %3563 = vmatmul.mubr.msk.f32.vlgmr.msra.gmra.mxu1 %vm1318_vm15, %v1828_v31 }
 0x372   : > { %3568 = vmatmul.mubr.msk.f32.vlgmr.msra.gmra.mxu0 %vm1318_vm15, %v1826_v32  ;;  %2575 = vst.msk [vmem:[#allocation2 + $0x7] sm:$0x1] %vm1315_vm10, %v3723_v5  ;;  %3571 = vmatpush3.msk.msra.mxu1 %vm1328_vm12, %v3343_v30  ;;  %v1983_v33 = vld [vmem:[#allocation2 + $0x9] sm:$0xff]  ;;  %v3374_v32 = vld [vmem:[%s4334_s26 + $0x4] sm:$0x3] }
 0x373   : > { %3572 = vmatprep.mubr.msk.f32.mxu1 %vm3724_vm4, %v3723_v5  ;;  %3586 = vmatprep.subr.mxu1 %v3723_v5 }
 0x374   : > { %3583 = vmatprep.mubr.msk.f32.mxu0 %vm3724_vm4, %v3723_v5  ;;  %3576 = vmatpush3.msra.mxu0 %v4034_v34 }
 0x375   : > { %3573 = vmatmul.mubr.msk.f32.vlgmr.msra.gmra.mxu1 %vm1318_vm15, %v1983_v33  ;;  %3577 = vmatprep.subr.mxu0 %v3723_v5 }
 0x376   : > { %3594 = vmatprep.mubr.msk.f32.mxu1 %vm3724_vm4, %v3723_v5  ;;  %3587 = vmatpush3.msra.mxu1 %v4039_v35 }
 0x377   : > { %3588 = vmatprep.subr.mxu1 %v3723_v5  ;;  %3578 = vmatpush3.msra.mxu0 %v4044_v36 }
 0x378   : > { %3589 = vmatpush3.msra.mxu1 %v4051_v37  ;;  %3579 = vmatprep.subr.mxu0 %v3723_v5 }
 0x379   : > { %3590 = vmatprep.subr.mxu1 %v3723_v5  ;;  %3580 = vmatpush3.msra.mxu0 %v4058_v38 }
 0x37a   : > { %3591 = vmatpush3.msra.mxu1 %v4063_v39  ;;  %3581 = vmatprep.subr.mxu0 %v3723_v5 }
 0x37b   : > { %3592 = vmatprep.subr.mxu1 %v3723_v5  ;;  %3582 = vmatpush3.msra.mxu0 %v4072_v40 }
 0x37c   : > { %3593 = vmatpush3.msra.mxu1 %v4077_v41  ;;  %3597 = vmatprep.subr.mxu0 %v3723_v5 }
 0x37d   : > { %3608 = vmatprep.subr.mxu1 %v3723_v5 }
 0x431   : > { %v1903_v42 = vpop.f32.mrf.mxu1 }
 0x432   : > { %v1979_v43 = vpop.f32.mrf.mxu0 }
 0x433   : > { %v3564_v44 = vpop.f32.mrf.mxu1  ;;  %v1980_v46 = vadd.f32 %v1979_v43, %v1903_v42 }
 0x434   : > { %v3569_v45 = vpop.f32.mrf.mxu0 }
 0x435   : > { %v2058_v47 = vpop.f32.mrf.mxu1 }
 0x436   : > { %v2062_v49 = vadd.f32 %v2058_v47, %v1980_v46 }
 0x437   : > { %v3574_v50 = vpop.f32.mrf.mxu1 }
 0x438   : > { %v2070_v51 = vadd.f32 %v4090_v48, %v2062_v49 }
 0x43a   : > { %vm2071_vm6 = vcmp.ge.f32.partialorder %v2070_v51, 0.0  ;;  %v2072_v52 = vmul.f32 0.2, %v2070_v51 }
 0x43c   : > { %v2073_v53 = vsel %vm2071_vm6, %v2070_v51, %v2072_v52 }
 0x43d   : > { %2075 = vst.msk [vmem:[#allocation2 + $0x8] sm:$0xff] %vm2074_vm7, %v2073_v53 }
 0x444   : > { %v2081_v57 = vld [vmem:[#allocation2 + $0x9] sm:$0x1f] }
 0x445   : > { %v2076_v58 = vld [vmem:[#allocation2 + $0x8] sm:$0x1f]  ;;  %3584 = vmatmul.mubr.msk.f32.vlgmr.msra.gmra.mxu0 %vm2074_vm7, %v2081_v57 }
 0x446   : > { %3595 = vmatmul.mubr.msk.f32.vlgmr.msra.gmra.mxu1 %vm2074_vm7, %v2076_v58  ;;  %v2233_v61 = vld [vmem:[#allocation2 + $0xa] sm:$0x1f]  ;;  %3598 = vmatpush3.msra.mxu0 %v4097_v54 }
 0x447   : > { %v2313_v62 = vld [vmem:[#allocation2 + $0xb] sm:$0x1f]  ;;  %3609 = vmatpush3.msra.mxu1 %v4102_v55  ;;  %3599 = vmatprep.subr.mxu0 %v3723_v5 }
 0x448   : > { %2576 = vst.msk [vmem:[#allocation2 + $0xc] sm:$0x1] %vm1315_vm10, %v3723_v5  ;;  %3610 = vmatprep.subr.mxu1 %v3723_v5  ;;  %3600 = vmatpush3.msra.mxu0 %v4107_v59  ;;  %vm2825_vm10 = vcmask 257024  }
 0x449   : > { %3611 = vmatpush3.msra.mxu1 %v4114_v60  ;;  %3601 = vmatprep.subr.mxu0 %v3723_v5 }
 0x44a   : > { %3612 = vmatprep.subr.mxu1 %v3723_v5  ;;  %3602 = vmatpush3.msra.mxu0 %v4125_v63 }
 0x44b   : > { %3613 = vmatpush3.msra.mxu1 %v4130_v0  ;;  %3603 = vmatprep.subr.mxu0 %v3723_v5 }
 0x44c   : > { %3614 = vmatprep.subr.mxu1 %v3723_v5  ;;  %3604 = vmatpush3.msra.mxu0 %v4139_v1 }
 0x44d   : > { %3605 = vmatprep.mubr.msk.f32.mxu0 %vm3724_vm4, %v3723_v5  ;;  %3615 = vmatpush3.msra.mxu1 %v4146_v2 }
 0x44e   : > { %3616 = vmatprep.mubr.msk.f32.mxu1 %vm3724_vm4, %v3723_v5  ;;  %3606 = vmatmul.mubr.msk.f32.vlgmr.msra.gmra.mxu0 %vm2074_vm7, %v2233_v61 }
 0x44f   : > { %3617 = vmatmul.mubr.msk.f32.vlgmr.msra.gmra.mxu1 %vm2074_vm7, %v2313_v62  ;;  %3630 = vmatprep.subr.mxu1 %v3723_v5  ;;  %v3141_v62 = vld [vmem:[%s4337_s3] sm:$0x1] }
 0x450   : > { %3632 = vmatprep.mubr.msk.f32.mxu1 %vm3724_vm4, %v3723_v5  ;;  %3631 = vmatpush3.msk.msra.mxu1 %vm702_vm0, %v2488_v4  ;;  %vm2577_vm0 = vcmask 11264  }
 0x451   : > { %3619 = vmatprep.subr.mxu0 %v3723_v5  ;;  %3627 = vmatprep.mubr.msk.f32.mxu0 %vm3724_vm4, %v3723_v5 }
 0x452   : > { %3635 = vmatprep.subr.mxu1 %v3723_v5  ;;  %3620 = vmatpush3.msra.mxu0 %v4176_v6 }
 0x453   : > { %3633 = vmatmul.mubr.msk.f32.vlgmr.msra.gmra.mxu1 %vm695_vm1, %v3967_v56  ;;  %3621 = vmatprep.subr.mxu0 %v3723_v5  ;;  %v4190_v56 = vld [vmem:[%s4305_s7 + $0x8] sm:$0xff] }
 0x454   : > { %3637 = vmatprep.mubr.msk.f32.mxu1 %vm3724_vm4, %v3723_v5  ;;  %3622 = vmatpush3.msra.mxu0 %v4183_v7 }
 0x455   : > { %3623 = vmatprep.subr.mxu0 %v3723_v5  ;;  %3636 = vmatpush3.msk.msra.mxu1 %vm1328_vm12, %v3369_v9 }
 0x456   : > { %3624 = vmatpush3.msra.mxu0 %v4190_v56  ;;  %3645 = vmatprep.subr.mxu1 %v3723_v5 }
 0x457   : > { %3625 = vmatprep.subr.mxu0 %v3723_v5 }
 0x458   : > { %3626 = vmatpush3.msra.mxu0 %v4197_v8 }
 0x459   : > { %3640 = vmatprep.subr.mxu0 %v3723_v5 }
 0x505   : > { %v2156_v10 = vpop.f32.mrf.mxu0 }
 0x506   : > { %v2229_v11 = vpop.f32.mrf.mxu1 }
 0x507   : > { %v3585_v12 = vpop.f32.mrf.mxu0  ;;  %v2230_v14 = vadd.f32 %v2229_v11, %v2156_v10  ;;  %v3232_v11 = vsub.s32 0, %v3861_v3 }
 0x508   : > { %v3596_v13 = vpop.f32.mrf.mxu1  ;;  %v3228_v12 = vstv %s3227_s15 }
 0x50e   : > { %v2308_v15 = vpop.f32.mrf.mxu0 }
 0x50f   : > { %v2388_v16 = vpop.f32.mrf.mxu1  ;;  %v2312_v17 = vadd.f32 %v2308_v15, %v2230_v14 }
 0x510   : > { %v3607_v19 = vpop.f32.mrf.mxu0 }
 0x511   : > { %v3618_v20 = vpop.f32.mrf.mxu1  ;;  %v2392_v22 = vadd.f32 %v2388_v16, %v2312_v17 }
 0x513   : > { %v2568_v23 = vpop.f32.mrf.mxu1  ;;  %v2400_v24 = vadd.f32 %v3363_v18, %v2392_v22 }
 0x514   : > { %v2569_v25 = vadd.f32 %v3366_v21, %v2568_v23 }
 0x515   : > { %v3634_v26 = vpop.f32.mrf.mxu1  ;;  %vm2401_vm1 = vcmp.ge.f32.partialorder %v2400_v24, 0.0  ;;  %v2402_v27 = vmul.f32 0.2, %v2400_v24 }
 0x516   : > { %vm2572_vm8 = vcmp.ge.f32.partialorder %v2569_v25, 0.0  ;;  %v2573_v28 = vmul.f32 0.2, %v2569_v25 }
 0x517   : > { %v2403_v31 = vsel %vm2401_vm1, %v2400_v24, %v2402_v27 }
 0x518   : > { %v2574_v30 = vsel %vm2572_vm8, %v2569_v25, %v2573_v28  ;;  %3628 = vmatmul.mubr.msk.f32.vlgmr.msra.gmra.mxu0 %vm2074_vm7, %v2403_v31 }
 0x519   : > { %2578 = vst.msk [vmem:[#allocation2 + $0x8] sm:$0xf] %vm2577_vm0, %v2574_v30  ;;  %3641 = vmatpush3.msk.msra.mxu0 %vm1328_vm12, %v2580_v29  ;;  %3642 = vmatprep.mubr.msk.f32.mxu0 %vm3724_vm4, %v3723_v5 }
 0x51a   : > { %3650 = vmatprep.subr.mxu0 %v3723_v5 }
 0x520   : > { %v2581_v33 = vld [vmem:[#allocation2 + $0x8] sm:$0xf] }
 0x521   : > { %v2579_v42 = vld [vmem:[#allocation2 + $0x7] sm:$0xf]  ;;  %3638 = vmatmul.mubr.msk.f32.vlgmr.msra.gmra.mxu1 %vm1318_vm15, %v2581_v33 }
 0x522   : > { %3643 = vmatmul.mubr.msk.f32.vlgmr.msra.gmra.mxu0 %vm1318_vm15, %v2579_v42  ;;  %3646 = vmatpush3.msk.msra.mxu1 %vm1328_vm12, %v3374_v32  ;;  %v2735_v43 = vld [vmem:[#allocation2 + $0x9] sm:$0xf] }
 0x523   : > { %3647 = vmatprep.mubr.msk.f32.mxu1 %vm3724_vm4, %v3723_v5  ;;  %3661 = vmatprep.subr.mxu1 %v3723_v5 }
 0x524   : > { %3651 = vmatpush3.msra.mxu0 %v4034_v34  ;;  %3658 = vmatprep.mubr.msk.f32.mxu0 %vm3724_vm4, %v3723_v5 }
 0x525   : > { %3652 = vmatprep.subr.mxu0 %v3723_v5  ;;  %3648 = vmatmul.mubr.msk.f32.vlgmr.msra.gmra.mxu1 %vm1318_vm15, %v2735_v43 }
 0x526   : > { %3653 = vmatpush3.msra.mxu0 %v4044_v36  ;;  %3662 = vmatpush3.msra.mxu1 %v4039_v35 }
 0x527   : > { %3654 = vmatprep.subr.mxu0 %v3723_v5  ;;  %3663 = vmatprep.subr.mxu1 %v3723_v5 }
 0x528   : > { %3655 = vmatpush3.msra.mxu0 %v4058_v38  ;;  %3664 = vmatpush3.msra.mxu1 %v4051_v37 }
 0x529   : > { %3656 = vmatprep.subr.mxu0 %v3723_v5  ;;  %3665 = vmatprep.subr.mxu1 %v3723_v5 }
 0x52a   : > { %3657 = vmatpush3.msra.mxu0 %v4072_v40  ;;  %3666 = vmatpush3.msra.mxu1 %v4063_v39 }
 0x52b   : > { %3669 = vmatprep.mubr.msk.f32.mxu1 %vm3724_vm4, %v3723_v5  ;;  %3667 = vmatprep.subr.mxu1 %v3723_v5 }
 0x52c   : > { %3672 = vmatprep.subr.mxu0 %v3723_v5  ;;  %3668 = vmatpush3.msra.mxu1 %v4077_v41 }
 0x52d   : > { %3683 = vmatprep.subr.mxu1 %v3723_v5 }
 0x5d8   : > { %v4250_v34 = vpop.f32.mrf.mxu0 }
 0x5da   : > { %v3629_v35 = vpop.f32.mrf.mxu0 }
 0x5e1   : > { %v2655_v36 = vpop.f32.mrf.mxu1 }
 0x5e2   : > { %v2731_v37 = vpop.f32.mrf.mxu0 }
 0x5e3   : > { %v3639_v38 = vpop.f32.mrf.mxu1  ;;  %v2732_v44 = vadd.f32 %v2731_v37, %v2655_v36 }
 0x5e4   : > { %v3644_v40 = vpop.f32.mrf.mxu0 }
 0x5e5   : > { %v2809_v39 = vpop.f32.mrf.mxu1 }
 0x5e6   : > { %v2813_v45 = vadd.f32 %v2809_v39, %v2732_v44 }
 0x5e7   : > { %v3649_v46 = vpop.f32.mrf.mxu1 }
 0x5e8   : > { %v2821_v47 = vadd.f32 %v4090_v48, %v2813_v45 }
 0x5ea   : > { %vm2822_vm9 = vcmp.ge.f32.partialorder %v2821_v47, 0.0  ;;  %v2823_v49 = vmul.f32 0.2, %v2821_v47 }
 0x5ec   : > { %v2824_v50 = vsel %vm2822_vm9, %v2821_v47, %v2823_v49 }
 0x5ed   : > { %2826 = vst.msk [vmem:[#allocation2 + $0x8] sm:$0xf] %vm2825_vm10, %v2824_v50 }
 0x5f4   : > { %v2832_v41 = vld [vmem:[#allocation2 + $0x9] sm:$0x1]  ;;  %v2827_v51 = vld [vmem:[#allocation2 + $0x8] sm:$0x1]  ;;  %v2983_v48 = vld [vmem:[#allocation2 + $0xa] sm:$0x1] }
 0x5f5   : > { %3659 = vmatmul.mubr.msk.f32.vlgmr.msra.gmra.mxu0 %vm2074_vm7, %v2832_v41  ;;  %3670 = vmatmul.mubr.msk.f32.vlgmr.msra.gmra.mxu1 %vm2074_vm7, %v2827_v51  ;;  %v3062_v52 = vld [vmem:[#allocation2 + $0xb] sm:$0x1] }
 0x5f6   : > { %3673 = vmatpush3.msra.mxu0 %v4097_v54  ;;  %3684 = vmatpush3.msra.mxu1 %v4102_v55 }
 0x5f7   : > { %3674 = vmatprep.subr.mxu0 %v3723_v5  ;;  %3685 = vmatprep.subr.mxu1 %v3723_v5 }
 0x5f8   : > { %3675 = vmatpush3.msra.mxu0 %v4107_v59  ;;  %3686 = vmatpush3.msra.mxu1 %v4114_v60 }
 0x5f9   : > { %3676 = vmatprep.subr.mxu0 %v3723_v5  ;;  %3687 = vmatprep.subr.mxu1 %v3723_v5 }
 0x5fa   : > { %3677 = vmatpush3.msra.mxu0 %v4125_v63  ;;  %3688 = vmatpush3.msra.mxu1 %v4130_v0 }
 0x5fb   : > { %3678 = vmatprep.subr.mxu0 %v3723_v5  ;;  %3689 = vmatprep.subr.mxu1 %v3723_v5 }
 0x5fc   : > { %3679 = vmatpush3.msra.mxu0 %v4139_v1  ;;  %3680 = vmatprep.mubr.msk.f32.mxu0 %vm3724_vm4, %v3723_v5 }
 0x5fd   : > { %3690 = vmatpush3.msra.mxu1 %v4146_v2  ;;  %3691 = vmatprep.mubr.msk.f32.mxu1 %vm3724_vm4, %v3723_v5 }
 0x5fe   : > { %3681 = vmatmul.mubr.msk.f32.vlgmr.msra.gmra.mxu0 %vm2074_vm7, %v2983_v48  ;;  %3692 = vmatmul.mubr.msk.f32.vlgmr.msra.gmra.mxu1 %vm2074_vm7, %v3062_v52 }
 0x5ff   : > { %3694 = vmatprep.subr.mxu0 %v3723_v5  ;;  %3702 = vmatprep.mubr.msk.f32.mxu0 %vm3724_vm4, %v3723_v5 }
 0x600   : > { %3695 = vmatpush3.msra.mxu0 %v4176_v6  ;;  %v3364_v6 = vld [vmem:[#allocation4] ss:$0 sm:$0xff] }
 0x601   : > { %3696 = vmatprep.subr.mxu0 %v3723_v5  ;;  %v2485_v9 = vadd.f32 %v3364_v6, %v4250_v34 }
 0x602   : > { %3697 = vmatpush3.msra.mxu0 %v4183_v7  ;;  %v3150_v7 = vld [vmem:[#allocation4] sm:$0x1] }
 0x603   : > { %3698 = vmatprep.subr.mxu0 %v3723_v5  ;;  %v3229_v15 = vmul.f32 %v3228_v12, %v2485_v9 }
 0x604   : > { %3699 = vmatpush3.msra.mxu0 %v4190_v56 }
 0x605   : > { %3700 = vmatprep.subr.mxu0 %v3723_v5 }
 0x606   : > { %3701 = vmatpush3.msra.mxu0 %v4197_v8  ;;  %v3225_v8 = vstv %s3224_s14 }
 0x6b5   : > { %v2906_v53 = vpop.f32.mrf.mxu0  ;;  %v2979_v54 = vpop.f32.mrf.mxu1 }
 0x6b6   : > { %v2980_v58 = vadd.f32 %v2979_v54, %v2906_v53 }
 0x6b7   : > { %v3660_v55 = vpop.f32.mrf.mxu0  ;;  %v3671_v57 = vpop.f32.mrf.mxu1 }
 0x6be   : > { %v3057_v59 = vpop.f32.mrf.mxu0  ;;  %v3136_v60 = vpop.f32.mrf.mxu1 }
 0x6bf   : > { %v3061_v61 = vadd.f32 %v3057_v59, %v2980_v58 }
 0x6c0   : > { %v3682_v63 = vpop.f32.mrf.mxu0  ;;  %v3693_v0 = vpop.f32.mrf.mxu1 }
 0x6c1   : > { %v3140_v1 = vadd.f32 %v3136_v60, %v3061_v61 }
 0x6c3   : > { %v3142_v2 = vadd.f32 %v3141_v62, %v3140_v1 }
 0x6c5   : > { %vm3143_vm4 = vcmp.ge.f32.partialorder %v3142_v2, 0.0  ;;  %v3144_v5 = vmul.f32 0.2, %v3142_v2 }
 0x6c7   : > { %v3145_v4 = vsel %vm3143_vm4, %v3142_v2, %v3144_v5 }
 0x6c8   : > { %3703 = vmatmul.mubr.msk.f32.vlgmr.msra.gmra.mxu0 %vm2074_vm7, %v3145_v4 }
 0x788   : > { %v3220_v56 = vpop.f32.mrf.mxu0 }
 0x789   : > { %v3221_v10 = vadd.f32 %v3220_v56, %v3150_v7 }
 0x78a   : > { %v3704_v13 = vpop.f32.mrf.mxu0 }
 0x78b   : > { %v3226_v14 = vmul.f32 %v3225_v8, %v3221_v10 }
 0x78d   : > { %v3233_v16 = vrot.slane %v3226_v14, %v3232_v11 }
 0x78f   : > { %v3234_v17 = vadd.f32 %v3233_v16, %v3229_v15 }
 0x791   : > { %3236 = vst.msk [vmem:[%s684_s29] sm:$0x1f] %vm3235_vm11, %v3234_v17 }
 0x792 PF: > { %s35_s4 = sadd.s32 1, %s3721_s4  }
 0x793   : > { %p32_p4 = scmp.ge.s32.totalorder %s35_s4, 4  }
 0x795   :  { %34 = sbr.rel (!%p32_p4) target bundleno = 17 (0x11), region = 149 }

</bundles_post_ra>
